<compile_context>
chip_gen: v7x
topology: tpu7x:2x2x1
jax: 0.10.0
libtpu: 0.0.40
codegen_flags: <defaults>
</compile_context>

<pallas_src>
import jax
import jax.numpy as jnp
import numpy as np
from jax import lax
from jax.experimental import pallas as pl
from jax.experimental.pallas import tpu as pltpu

_GRP = 128        # lane-aligned group stride in the packed fc layout
_LP = 3 * _GRP    # packed fc output width: [k | scalars] | [e] | [a]


def _softplus(x):
    return jnp.logaddexp(x, 0.0)


# --------------------------- shared head math ------------------------------
def _write_head_step(emb, w_prev, mem, W, b):
    """One NTM write-head step on VMEM-resident values.

    emb: (bb, C)   w_prev: (bb, N)   mem: (bb, M, N)   W: (C, _LP)   b: (1, _LP)
    Returns (w, mem_new) with shapes (bb, N), (bb, M, N).
    """
    M = mem.shape[1]
    N = mem.shape[2]

    # fc_write: one MXU matmul covers every (lane-aligned) column group.
    o = jnp.dot(emb, W, preferred_element_type=jnp.float32) + b      # (bb, _LP)

    # _split_cols on the packed layout: group0 = [k | beta g s0 s1 s2 gamma].
    k = o[:, 0:M]                               # (bb, M)
    sc = o[:, M:M + 6]                          # (bb, 6)
    e = o[:, _GRP:_GRP + M]                     # (bb, M)
    a = o[:, 2 * _GRP:2 * _GRP + M]             # (bb, M)

    beta = _softplus(sc[:, 0:1])
    g = jax.nn.sigmoid(sc[:, 1:2])
    s = jax.nn.softmax(_softplus(sc[:, 2:5]), axis=1)
    gamma = 1.0 + _softplus(sc[:, 5:6])
    e = jax.nn.sigmoid(e)

    # Content addressing: softmax(beta * cosine_similarity(mem, k)).
    eps = 1e-16
    mem_e = mem + eps                           # (bb, M, N)
    k_e = k + eps                               # (bb, M)
    if M >= 128:
        # Wide memory: contraction on the MXU instead of VPU mul + XLU reduce.
        dot = lax.dot_general(k_e, mem_e, (((1,), (1,)), ((0,), (0,))),
                              preferred_element_type=jnp.float32)    # (bb, N)
    else:
        dot = jnp.sum(mem_e * k_e[:, :, None], axis=1)               # (bb, N)
    norm_m_sq = jnp.sum(mem_e * mem_e, axis=1)                       # (bb, N)
    norm_k_sq = jnp.sum(k_e * k_e, axis=1, keepdims=True)            # (bb, 1)

    # EUP rsqrt on clamped squared norms == 1 / max(norm, 1e-8) exactly.
    sim = dot * lax.rsqrt(jnp.maximum(norm_m_sq, 1e-16)) \
              * lax.rsqrt(jnp.maximum(norm_k_sq, 1e-16))
    wc = jax.nn.softmax(beta * sim, axis=1)                          # (bb, N)

    # Interpolate with previous weights.
    wg = g * wc + (1.0 - g) * w_prev                                 # (bb, N)

    # Circular 3-tap shift (XLU rotations, jnp.roll semantics, shift >= 0).
    wg_m1 = pltpu.roll(wg, 1, axis=1)         # wg[(i-1) % N]
    wg_p1 = pltpu.roll(wg, N - 1, axis=1)     # wg[(i+1) % N]
    w_hat = s[:, 0:1] * wg_m1 + s[:, 1:2] * wg + s[:, 2:3] * wg_p1
    w_hat = jnp.maximum(w_hat, 0.0)           # keep the >= 0 invariant explicit

    # Sharpen: pow via exp(gamma*log(.)) (w_hat >= 0; 0 -> exp(-inf) = 0),
    # reciprocal via EUP vrcp + one Newton step (full f32 accuracy, no divide).
    w_pow = jnp.exp(gamma * jnp.log(w_hat))
    denom = jnp.sum(w_pow, axis=1, keepdims=True) + 1e-16
    r = pl.reciprocal(denom, approx=True)
    r = r * (2.0 - denom * r)
    w = w_pow * r                                                    # (bb, N)

    # Memory write: mem * (1 - w (x) e) + w (x) a   (in (B, M, N) layout).
    w_b = w[:, None, :]                                              # (bb, 1, N)
    mem_new = mem * (1.0 - e[:, :, None] * w_b) + a[:, :, None] * w_b
    return w, mem_new


# --------------------------- single-step kernel ----------------------------
def ntm_write_head_kernel(emb_ref, wprev_ref, mem_ref, w_fc_ref, b_fc_ref,
                          w_out_ref, mem_out_ref):
    w, mem_new = _write_head_step(emb_ref[...], wprev_ref[...], mem_ref[...],
                                  w_fc_ref[...], b_fc_ref[...])
    w_out_ref[...] = w
    mem_out_ref[...] = mem_new


# ------------------------ time-fused (recurrent) kernel ---------------------
def ntm_write_head_seq_kernel(emb_ref, w0_ref, mem0_ref, w_fc_ref, b_fc_ref,
                              w_seq_ref, mem_out_ref, mem_sc, w_sc):
    t = pl.program_id(1)

    @pl.when(t == 0)
    def _():                                   # load resident state once
        mem_sc[...] = mem0_ref[...]
        w_sc[...] = w0_ref[...]

    w, mem_new = _write_head_step(emb_ref[0], w_sc[...], mem_sc[...],
                                  w_fc_ref[...], b_fc_ref[...])
    w_sc[...] = w
    mem_sc[...] = mem_new
    w_seq_ref[0] = w

    @pl.when(t == pl.num_programs(1) - 1)
    def _():                                   # write memory back to HBM once
        mem_out_ref[...] = mem_sc[...]


# ------------------------------ tiling helpers ------------------------------
def _num_tensorcores():
    """Best-effort TensorCore count (v7x has 2); falls back to 1."""
    try:
        info = pltpu.get_tpu_info()
        for attr in ("num_cores", "core_count", "num_tensorcores"):
            v = getattr(info, attr, None)
            if v:
                return max(1, int(v))
    except Exception:
        pass
    try:
        v = getattr(jax.devices()[0], "num_cores", None)
        if v:
            return max(1, int(v))
    except Exception:
        pass
    return 1


def _pick_batch_tile(B, *, max_bb=256, min_grid_steps=1):
    """Largest batch tile that divides B, is a multiple of 8 (or == B),
    is <= max_bb, and leaves >= min_grid_steps grid steps when B permits."""
    if B % 8 != 0:
        return B                       # single full block (block == dim is legal)
    cap = min(max_bb, B)
    if min_grid_steps > 1 and B // 8 >= min_grid_steps:
        cap = min(cap, B // min_grid_steps)
    cap = max(8, cap - cap % 8)
    best = 8
    for d in range(8, cap + 1, 8):
        if B % d == 0:
            best = d
    return best


def _seq_max_bb(M, N, budget_bytes=24 << 20):
    """Cap the resident batch tile of the fused variant so scratch + pipeline
    buffers (~5x the (bb, M, N) f32 tile) stay inside a portable VMEM budget
    (v7x only has 64 MiB physical / 32 MiB scoped)."""
    return int(max(8, min(256, budget_bytes // (5 * 4 * M * N))))


def _vmem_limit_bytes(bb, M, N, C, resident_state=False):
    tile = 4 * bb * M * N
    est = (2 * 2 * tile                      # in + out memory tiles, double-buffered
           + 2 * 4 * bb * (C + 3 * N)        # emb / w_prev / w_out tiles
           + 2 * 4 * (C + 1) * _LP)          # weights + bias
    if resident_state:
        est += tile + 4 * bb * N             # VMEM scratch state
    return int(min(48 << 20, max(32 << 20, 2 * est)))


# ------------------------------ call wrappers -------------------------------
def _ntm_write_head_call(embeddings, w_prev, memory_t, w_fc_packed, b_fc_packed):
    B, C = embeddings.shape
    _, N = w_prev.shape
    M = memory_t.shape[1]
    bb = _pick_batch_tile(B, max_bb=256, min_grid_steps=_num_tensorcores())
    grid = (B // bb,)
    cost = pl.CostEstimate(
        flops=2 * B * C * _LP + 12 * B * M * N + 20 * B * N,
        transcendentals=8 * B * N + 2 * B * M + 16 * B,
        bytes_accessed=4 * (B * C + 3 * B * N + 3 * B * M * N + (C + 1) * _LP))
    return pl.pallas_call(
        ntm_write_head_kernel,
        out_shape=(jax.ShapeDtypeStruct((B, N), jnp.float32),
                   jax.ShapeDtypeStruct((B, M, N), jnp.float32)),
        grid=grid,
        in_specs=[
            pl.BlockSpec((bb, C), lambda i: (i, 0)),
            pl.BlockSpec((bb, N), lambda i: (i, 0)),
            pl.BlockSpec((bb, M, N), lambda i: (i, 0, 0)),
            pl.BlockSpec((C, _LP), lambda i: (0, 0)),
            pl.BlockSpec((1, _LP), lambda i: (0, 0)),
        ],
        out_specs=(
            pl.BlockSpec((bb, N), lambda i: (i, 0)),
            pl.BlockSpec((bb, M, N), lambda i: (i, 0, 0)),
        ),
        input_output_aliases={2: 1},     # memory_t is updated in place in HBM
        cost_estimate=cost,
        compiler_params=pltpu.CompilerParams(
            dimension_semantics=("parallel",),
            vmem_limit_bytes=_vmem_limit_bytes(bb, M, N, C)),
    )(embeddings, w_prev, memory_t, w_fc_packed, b_fc_packed)


def _ntm_write_head_seq_call(emb_seq, w0, memory_t, w_fc_packed, b_fc_packed):
    T, B, C = emb_seq.shape
    _, N = w0.shape
    M = memory_t.shape[1]
    bb = _pick_batch_tile(B, max_bb=_seq_max_bb(M, N),
                          min_grid_steps=_num_tensorcores())
    grid = (B // bb, T)
    cost = pl.CostEstimate(
        flops=T * (2 * B * C * _LP + 12 * B * M * N + 20 * B * N),
        transcendentals=T * (8 * B * N + 2 * B * M + 16 * B),
        bytes_accessed=4 * (T * B * (C + N) + 2 * B * (N + M * N) + (C + 1) * _LP))
    return pl.pallas_call(
        ntm_write_head_seq_kernel,
        out_shape=(jax.ShapeDtypeStruct((T, B, N), jnp.float32),
                   jax.ShapeDtypeStruct((B, M, N), jnp.float32)),
        grid=grid,
        in_specs=[
            pl.BlockSpec((1, bb, C), lambda b, t: (t, b, 0)),
            pl.BlockSpec((bb, N), lambda b, t: (b, 0)),
            pl.BlockSpec((bb, M, N), lambda b, t: (b, 0, 0)),
            pl.BlockSpec((C, _LP), lambda b, t: (0, 0)),
            pl.BlockSpec((1, _LP), lambda b, t: (0, 0)),
        ],
        out_specs=(
            pl.BlockSpec((1, bb, N), lambda b, t: (t, b, 0)),
            pl.BlockSpec((bb, M, N), lambda b, t: (b, 0, 0)),
        ),
        scratch_shapes=[pltpu.VMEM((bb, M, N), jnp.float32),
                        pltpu.VMEM((bb, N), jnp.float32)],
        input_output_aliases={2: 1},     # memory_t is updated in place in HBM
        cost_estimate=cost,
        compiler_params=pltpu.CompilerParams(
            dimension_semantics=("parallel", "arbitrary"),
            vmem_limit_bytes=_vmem_limit_bytes(bb, M, N, C, resident_state=True)),
    )(emb_seq, w0, memory_t, w_fc_packed, b_fc_packed)


# Donate memory_t (arg 2) so XLA honors the in-place alias without a copy.
ntm_write_head = jax.jit(_ntm_write_head_call, donate_argnums=(2,))
ntm_write_head_seq = jax.jit(_ntm_write_head_seq_call, donate_argnums=(2,))


def pack_fc_params(w_fc, b_fc, M):
    """Re-pack fc_write params (C, 3M+6) into lane-aligned groups (C, 3*128):
    group0 = [k (M) | beta g s0 s1 s2 gamma], group1 = [e], group2 = [a]."""
    C, L = w_fc.shape
    assert L == 3 * M + 6 and M + 6 <= _GRP
    b_fc = b_fc.reshape(1, L)
    w_p = jnp.zeros((C, _LP), jnp.float32)
    b_p = jnp.zeros((1, _LP), jnp.float32)
    w_p = w_p.at[:, 0:M].set(w_fc[:, 0:M])                                 # k
    w_p = w_p.at[:, M:M + 6].set(w_fc[:, M:M + 6])                         # scalars
    w_p = w_p.at[:, _GRP:_GRP + M].set(w_fc[:, M + 6:2 * M + 6])           # e
    w_p = w_p.at[:, 2 * _GRP:2 * _GRP + M].set(w_fc[:, 2 * M + 6:3 * M + 6])  # a
    b_p = b_p.at[:, 0:M].set(b_fc[:, 0:M])
    b_p = b_p.at[:, M:M + 6].set(b_fc[:, M:M + 6])
    b_p = b_p.at[:, _GRP:_GRP + M].set(b_fc[:, M + 6:2 * M + 6])
    b_p = b_p.at[:, 2 * _GRP:2 * _GRP + M].set(b_fc[:, 2 * M + 6:3 * M + 6])
    return w_p, b_p


# ---------------- pure-JAX reference (mirrors the PyTorch semantics) --------
def ntm_write_head_ref(embeddings, w_prev, memory, w_fc, b_fc):
    M = memory.shape[-1]
    o = embeddings @ w_fc + b_fc
    k, beta, g, s, gamma, e, a = (
        o[:, 0:M], o[:, M:M + 1], o[:, M + 1:M + 2], o[:, M + 2:M + 5],
        o[:, M + 5:M + 6], o[:, M + 6:2 * M + 6], o[:, 2 * M + 6:3 * M + 6])
    beta = _softplus(beta)
    g = jax.nn.sigmoid(g)
    s = jax.nn.softmax(_softplus(s), axis=1)
    gamma = 1.0 + _softplus(gamma)
    e = jax.nn.sigmoid(e)

    eps = 1e-16
    mem_e = memory + eps
    k_e = k[:, None, :] + eps
    sim = jnp.sum(mem_e * k_e, axis=-1) / (
        jnp.maximum(jnp.linalg.norm(mem_e, axis=-1), 1e-8)
        * jnp.maximum(jnp.linalg.norm(k_e, axis=-1), 1e-8))
    wc = jax.nn.softmax(beta * sim, axis=1)
    wg = g * wc + (1.0 - g) * w_prev
    w_hat = (s[:, 0:1] * jnp.roll(wg, 1, axis=1)
             + s[:, 1:2] * wg
             + s[:, 2:3] * jnp.roll(wg, -1, axis=1))
    w_pow = jnp.power(w_hat, gamma)
    w = w_pow / (jnp.sum(w_pow, axis=1, keepdims=True) + 1e-16)
    erase = w[:, :, None] * e[:, None, :]
    add = w[:, :, None] * a[:, None, :]
    return w, memory * (1.0 - erase) + add


if __name__ == "__main__":
    # batch, controller_size, memory rows N, memory width M, timesteps T
    B, C, N, M, T = 16, 32, 128, 16, 4
    L = 3 * M + 6                     # sum(write_lengths) = M+1+1+3+1+M+M

    key = jax.random.PRNGKey(0)
    k1, k2, k3, k4, k5, k6 = jax.random.split(key, 6)

    # fc_write parameters: xavier_uniform(gain=1.4) weight, normal(std=0.01) bias
    bound = 1.4 * np.sqrt(6.0 / (C + L))
    w_fc = jax.random.uniform(k1, (C, L), jnp.float32, -bound, bound)   # (in, out)
    b_fc = (0.01 * jax.random.normal(k2, (L,), jnp.float32)).reshape(1, L)

    embeddings = jax.random.normal(k3, (B, C), jnp.float32)
    w_prev = jax.nn.softmax(jax.random.normal(k4, (B, N), jnp.float32), axis=1)
    memory = 0.1 * jax.random.normal(k5, (B, N, M), jnp.float32)
    emb_seq = jax.random.normal(k6, (T, B, C), jnp.float32)

    # Kernel-native layouts (built once; memory_t is the persistent NTM state).
    w_fc_p, b_fc_p = pack_fc_params(w_fc, b_fc, M)

    # ---------------- single-step kernel vs reference ----------------
    memory_t = jnp.transpose(memory, (0, 2, 1))   # (B, M, N), lane-dense in N
    w, mem_new_t = ntm_write_head(embeddings, w_prev, memory_t, w_fc_p, b_fc_p)
    jax.block_until_ready((w, mem_new_t))

    w_ref, mem_new_ref = ntm_write_head_ref(embeddings, w_prev, memory, w_fc, b_fc)
    np.testing.assert_allclose(np.asarray(w), np.asarray(w_ref),
                               rtol=1e-5, atol=1e-5)
    np.testing.assert_allclose(
        np.asarray(jnp.transpose(mem_new_t, (0, 2, 1))),
        np.asarray(mem_new_ref), rtol=1e-5, atol=1e-5)
    assert np.allclose(np.asarray(w).sum(axis=1), 1.0, atol=1e-4)

    # ---------------- time-fused kernel vs step-by-step reference ----------------
    memory_t2 = jnp.transpose(memory, (0, 2, 1))  # fresh copy (previous was donated)
    w_seq, mem_seq_t = ntm_write_head_seq(emb_seq, w_prev, memory_t2, w_fc_p, b_fc_p)
    jax.block_until_ready((w_seq, mem_seq_t))

    w_cur, mem_cur = w_prev, memory
    for t in range(T):
        w_cur, mem_cur = ntm_write_head_ref(emb_seq[t], w_cur, mem_cur, w_fc, b_fc)
        np.testing.assert_allclose(np.asarray(w_seq[t]), np.asarray(w_cur),
                                   rtol=1e-4, atol=1e-5)
    np.testing.assert_allclose(
        np.asarray(jnp.transpose(mem_seq_t, (0, 2, 1))),
        np.asarray(mem_cur), rtol=1e-4, atol=1e-5)
    assert np.allclose(np.asarray(w_seq).sum(axis=-1), 1.0, atol=1e-4)

    print("KERNEL_OK")
</pallas_src>

<mosaic_0001>
module attributes {stable_mosaic.version = 11 : i64} {
  func.func @ntm_write_head_kernel(%arg0: i32, %arg1: memref<16x32xf32, #tpu.memory_space<vmem>>, %arg2: memref<16x128xf32, #tpu.memory_space<vmem>>, %arg3: memref<16x16x128xf32, #tpu.memory_space<vmem>>, %arg4: memref<32x384xf32, #tpu.memory_space<vmem>>, %arg5: memref<1x384xf32, #tpu.memory_space<vmem>>, %arg6: memref<16x128xf32, #tpu.memory_space<vmem>>, %arg7: memref<16x16x128xf32, #tpu.memory_space<vmem>>) attributes {dimension_semantics = [#tpu.dimension_semantics<parallel>], iteration_bounds = array<i64: 1>, scalar_prefetch = 0 : i64, scratch_operands = 0 : i64, tpu.core_type = #tpu.core_type<tc>, window_params = [{transform_indices = @transform_0, window_bounds = array<i64: 16, 32>}, {transform_indices = @transform_1, window_bounds = array<i64: 16, 128>}, {transform_indices = @transform_2, window_bounds = array<i64: 16, 16, 128>}, {pipeline_mode = #tpu.pipeline_mode<synchronous>, transform_indices = @transform_3, window_bounds = array<i64: 32, 384>}, {pipeline_mode = #tpu.pipeline_mode<synchronous>, transform_indices = @transform_4, window_bounds = array<i64: 1, 384>}, {transform_indices = @transform_5, window_bounds = array<i64: 16, 128>}, {transform_indices = @transform_6, window_bounds = array<i64: 16, 16, 128>}]} {
    %c0 = arith.constant 0 : index
    %c0_0 = arith.constant 0 : index
    %0 = vector.load %arg1[%c0, %c0_0] : memref<16x32xf32, #tpu.memory_space<vmem>>, vector<16x32xf32>
    %c0_1 = arith.constant 0 : index
    %c0_2 = arith.constant 0 : index
    %1 = vector.load %arg2[%c0_1, %c0_2] : memref<16x128xf32, #tpu.memory_space<vmem>>, vector<16x128xf32>
    %c0_3 = arith.constant 0 : index
    %c0_4 = arith.constant 0 : index
    %c0_5 = arith.constant 0 : index
    %2 = vector.load %arg3[%c0_3, %c0_4, %c0_5] : memref<16x16x128xf32, #tpu.memory_space<vmem>>, vector<16x16x128xf32>
    %c0_6 = arith.constant 0 : index
    %c0_7 = arith.constant 0 : index
    %3 = vector.load %arg4[%c0_6, %c0_7] : memref<32x384xf32, #tpu.memory_space<vmem>>, vector<32x384xf32>
    %c0_8 = arith.constant 0 : index
    %c0_9 = arith.constant 0 : index
    %4 = vector.load %arg5[%c0_8, %c0_9] : memref<1x384xf32, #tpu.memory_space<vmem>>, vector<1x384xf32>
    %cst = arith.constant dense<0.000000e+00> : vector<16x384xf32>
    %5 = tpu.matmul %0, %3, %cst {dimension_numbers = #tpu.dot_dimension_numbers<[1], [0], [0], [1], [0, 0, 1, 1], [], []>} : vector<16x32xf32>, vector<32x384xf32>, vector<16x384xf32> -> vector<16x384xf32>
    %6 = vector.broadcast %4 : vector<1x384xf32> to vector<16x384xf32>
    %7 = arith.addf %5, %6 : vector<16x384xf32>
    %8 = vector.extract_strided_slice %7 {offsets = [0, 0], sizes = [16, 16], strides = [1, 1]} : vector<16x384xf32> to vector<16x16xf32>
    %9 = vector.extract_strided_slice %7 {offsets = [0, 16], sizes = [16, 6], strides = [1, 1]} : vector<16x384xf32> to vector<16x6xf32>
    %10 = vector.extract_strided_slice %7 {offsets = [0, 128], sizes = [16, 16], strides = [1, 1]} : vector<16x384xf32> to vector<16x16xf32>
    %11 = vector.extract_strided_slice %7 {offsets = [0, 256], sizes = [16, 16], strides = [1, 1]} : vector<16x384xf32> to vector<16x16xf32>
    %12 = vector.extract_strided_slice %9 {offsets = [0, 0], sizes = [16, 1], strides = [1, 1]} : vector<16x6xf32> to vector<16x1xf32>
    %cst_10 = arith.constant 0.000000e+00 : f32
    %13 = vector.broadcast %cst_10 : f32 to vector<16x1xf32>
    %14 = arith.maximumf %12, %13 : vector<16x1xf32>
    %15 = vector.broadcast %cst_10 : f32 to vector<16x1xf32>
    %16 = arith.subf %12, %15 : vector<16x1xf32>
    %17 = arith.cmpf one, %16, %16 : vector<16x1xf32>
    %18 = vector.broadcast %cst_10 : f32 to vector<16x1xf32>
    %19 = arith.addf %12, %18 : vector<16x1xf32>
    %20 = math.absf %16 : vector<16x1xf32>
    %cst_11 = arith.constant 0.000000e+00 : f32
    %21 = vector.broadcast %cst_11 : f32 to vector<16x1xf32>
    %22 = arith.subf %21, %20 : vector<16x1xf32>
    %23 = math.exp %22 : vector<16x1xf32>
    %24 = math.log1p %23 : vector<16x1xf32>
    %25 = arith.addf %14, %24 : vector<16x1xf32>
    %26 = arith.select %17, %19, %25 : vector<16x1xi1>, vector<16x1xf32>
    %27 = vector.extract_strided_slice %9 {offsets = [0, 1], sizes = [16, 1], strides = [1, 1]} : vector<16x6xf32> to vector<16x1xf32>
    %28 = arith.negf %27 : vector<16x1xf32>
    %29 = math.exp %28 : vector<16x1xf32>
    %cst_12 = arith.constant 1.000000e+00 : f32
    %30 = vector.broadcast %cst_12 : f32 to vector<16x1xf32>
    %31 = arith.addf %30, %29 : vector<16x1xf32>
    %32 = arith.divf %30, %31 : vector<16x1xf32>
    %33 = vector.extract_strided_slice %9 {offsets = [0, 2], sizes = [16, 3], strides = [1, 1]} : vector<16x6xf32> to vector<16x3xf32>
    %cst_13 = arith.constant 0.000000e+00 : f32
    %34 = vector.broadcast %cst_13 : f32 to vector<16x3xf32>
    %35 = arith.maximumf %33, %34 : vector<16x3xf32>
    %36 = vector.broadcast %cst_13 : f32 to vector<16x3xf32>
    %37 = arith.subf %33, %36 : vector<16x3xf32>
    %38 = arith.cmpf one, %37, %37 : vector<16x3xf32>
    %39 = vector.broadcast %cst_13 : f32 to vector<16x3xf32>
    %40 = arith.addf %33, %39 : vector<16x3xf32>
    %41 = math.absf %37 : vector<16x3xf32>
    %cst_14 = arith.constant 0.000000e+00 : f32
    %42 = vector.broadcast %cst_14 : f32 to vector<16x3xf32>
    %43 = arith.subf %42, %41 : vector<16x3xf32>
    %44 = math.exp %43 : vector<16x3xf32>
    %45 = math.log1p %44 : vector<16x3xf32>
    %46 = arith.addf %35, %45 : vector<16x3xf32>
    %47 = arith.select %38, %40, %46 : vector<16x3xi1>, vector<16x3xf32>
    %cst_15 = arith.constant dense<0xFF800000> : vector<16xf32>
    %48 = vector.multi_reduction <maximumf>, %47, %cst_15 [1] : vector<16x3xf32> to vector<16xf32>
    %cst_16 = arith.constant 0xFF800000 : f32
    %49 = vector.broadcast %cst_16 : f32 to vector<16xf32>
    %50 = arith.maximumf %49, %48 : vector<16xf32>
    %51 = vector.shape_cast %50 : vector<16xf32> to vector<16x1xf32>
    %52 = vector.broadcast %51 : vector<16x1xf32> to vector<16x3xf32>
    %53 = arith.subf %47, %52 : vector<16x3xf32>
    %54 = math.exp %53 : vector<16x3xf32>
    %cst_17 = arith.constant dense<0.000000e+00> : vector<16xf32>
    %55 = vector.multi_reduction <add>, %54, %cst_17 [1] : vector<16x3xf32> to vector<16xf32>
    %56 = vector.shape_cast %55 : vector<16xf32> to vector<16x1xf32>
    %57 = vector.broadcast %56 : vector<16x1xf32> to vector<16x3xf32>
    %58 = arith.divf %54, %57 : vector<16x3xf32>
    %59 = vector.extract_strided_slice %9 {offsets = [0, 5], sizes = [16, 1], strides = [1, 1]} : vector<16x6xf32> to vector<16x1xf32>
    %cst_18 = arith.constant 0.000000e+00 : f32
    %60 = vector.broadcast %cst_18 : f32 to vector<16x1xf32>
    %61 = arith.maximumf %59, %60 : vector<16x1xf32>
    %62 = vector.broadcast %cst_18 : f32 to vector<16x1xf32>
    %63 = arith.subf %59, %62 : vector<16x1xf32>
    %64 = arith.cmpf one, %63, %63 : vector<16x1xf32>
    %65 = vector.broadcast %cst_18 : f32 to vector<16x1xf32>
    %66 = arith.addf %59, %65 : vector<16x1xf32>
    %67 = math.absf %63 : vector<16x1xf32>
    %cst_19 = arith.constant 0.000000e+00 : f32
    %68 = vector.broadcast %cst_19 : f32 to vector<16x1xf32>
    %69 = arith.subf %68, %67 : vector<16x1xf32>
    %70 = math.exp %69 : vector<16x1xf32>
    %71 = math.log1p %70 : vector<16x1xf32>
    %72 = arith.addf %61, %71 : vector<16x1xf32>
    %73 = arith.select %64, %66, %72 : vector<16x1xi1>, vector<16x1xf32>
    %cst_20 = arith.constant 1.000000e+00 : f32
    %74 = vector.broadcast %cst_20 : f32 to vector<16x1xf32>
    %75 = arith.addf %74, %73 : vector<16x1xf32>
    %76 = arith.negf %10 : vector<16x16xf32>
    %77 = math.exp %76 : vector<16x16xf32>
    %cst_21 = arith.constant 1.000000e+00 : f32
    %78 = vector.broadcast %cst_21 : f32 to vector<16x16xf32>
    %79 = arith.addf %78, %77 : vector<16x16xf32>
    %80 = arith.divf %78, %79 : vector<16x16xf32>
    %cst_22 = arith.constant 1.000000e-16 : f32
    %81 = vector.broadcast %cst_22 : f32 to vector<16x16x128xf32>
    %82 = arith.addf %2, %81 : vector<16x16x128xf32>
    %cst_23 = arith.constant 1.000000e-16 : f32
    %83 = vector.broadcast %cst_23 : f32 to vector<16x16xf32>
    %84 = arith.addf %8, %83 : vector<16x16xf32>
    %85 = vector.shape_cast %84 : vector<16x16xf32> to vector<16x16x1xf32>
    %86 = vector.broadcast %85 : vector<16x16x1xf32> to vector<16x16x128xf32>
    %87 = arith.mulf %82, %86 : vector<16x16x128xf32>
    %cst_24 = arith.constant dense<0.000000e+00> : vector<16x128xf32>
    %88 = vector.multi_reduction <add>, %87, %cst_24 [1] : vector<16x16x128xf32> to vector<16x128xf32>
    %89 = arith.mulf %82, %82 : vector<16x16x128xf32>
    %cst_25 = arith.constant dense<0.000000e+00> : vector<16x128xf32>
    %90 = vector.multi_reduction <add>, %89, %cst_25 [1] : vector<16x16x128xf32> to vector<16x128xf32>
    %91 = arith.mulf %84, %84 : vector<16x16xf32>
    %cst_26 = arith.constant dense<0.000000e+00> : vector<16xf32>
    %92 = vector.multi_reduction <add>, %91, %cst_26 [1] : vector<16x16xf32> to vector<16xf32>
    %93 = vector.shape_cast %92 : vector<16xf32> to vector<16x1xf32>
    %cst_27 = arith.constant 1.000000e-16 : f32
    %94 = vector.broadcast %cst_27 : f32 to vector<16x128xf32>
    %95 = arith.maximumf %90, %94 : vector<16x128xf32>
    %96 = math.rsqrt %95 : vector<16x128xf32>
    %97 = arith.mulf %88, %96 : vector<16x128xf32>
    %cst_28 = arith.constant 1.000000e-16 : f32
    %98 = vector.broadcast %cst_28 : f32 to vector<16x1xf32>
    %99 = arith.maximumf %93, %98 : vector<16x1xf32>
    %100 = math.rsqrt %99 : vector<16x1xf32>
    %101 = vector.broadcast %100 : vector<16x1xf32> to vector<16x128xf32>
    %102 = arith.mulf %97, %101 : vector<16x128xf32>
    %103 = vector.broadcast %26 : vector<16x1xf32> to vector<16x128xf32>
    %104 = arith.mulf %103, %102 : vector<16x128xf32>
    %cst_29 = arith.constant dense<0xFF800000> : vector<16xf32>
    %105 = vector.multi_reduction <maximumf>, %104, %cst_29 [1] : vector<16x128xf32> to vector<16xf32>
    %cst_30 = arith.constant 0xFF800000 : f32
    %106 = vector.broadcast %cst_30 : f32 to vector<16xf32>
    %107 = arith.maximumf %106, %105 : vector<16xf32>
    %108 = vector.shape_cast %107 : vector<16xf32> to vector<16x1xf32>
    %109 = vector.broadcast %108 : vector<16x1xf32> to vector<16x128xf32>
    %110 = arith.subf %104, %109 : vector<16x128xf32>
    %111 = math.exp %110 : vector<16x128xf32>
    %cst_31 = arith.constant dense<0.000000e+00> : vector<16xf32>
    %112 = vector.multi_reduction <add>, %111, %cst_31 [1] : vector<16x128xf32> to vector<16xf32>
    %113 = vector.shape_cast %112 : vector<16xf32> to vector<16x1xf32>
    %114 = vector.broadcast %113 : vector<16x1xf32> to vector<16x128xf32>
    %115 = arith.divf %111, %114 : vector<16x128xf32>
    %116 = vector.broadcast %32 : vector<16x1xf32> to vector<16x128xf32>
    %117 = arith.mulf %116, %115 : vector<16x128xf32>
    %cst_32 = arith.constant 1.000000e+00 : f32
    %118 = vector.broadcast %cst_32 : f32 to vector<16x1xf32>
    %119 = arith.subf %118, %32 : vector<16x1xf32>
    %120 = vector.broadcast %119 : vector<16x1xf32> to vector<16x128xf32>
    %121 = arith.mulf %120, %1 : vector<16x128xf32>
    %122 = arith.addf %117, %121 : vector<16x128xf32>
    %c1_i32 = arith.constant 1 : i32
    %123 = tpu.dynamic_rotate %122 by %c1_i32 dim 1 : vector<16x128xf32>, i32 -> vector<16x128xf32>
    %c127_i32 = arith.constant 127 : i32
    %124 = tpu.dynamic_rotate %122 by %c127_i32 dim 1 : vector<16x128xf32>, i32 -> vector<16x128xf32>
    %125 = vector.extract_strided_slice %58 {offsets = [0, 0], sizes = [16, 1], strides = [1, 1]} : vector<16x3xf32> to vector<16x1xf32>
    %126 = vector.broadcast %125 : vector<16x1xf32> to vector<16x128xf32>
    %127 = arith.mulf %126, %123 : vector<16x128xf32>
    %128 = vector.extract_strided_slice %58 {offsets = [0, 1], sizes = [16, 1], strides = [1, 1]} : vector<16x3xf32> to vector<16x1xf32>
    %129 = vector.broadcast %128 : vector<16x1xf32> to vector<16x128xf32>
    %130 = arith.mulf %129, %122 : vector<16x128xf32>
    %131 = arith.addf %127, %130 : vector<16x128xf32>
    %132 = vector.extract_strided_slice %58 {offsets = [0, 2], sizes = [16, 1], strides = [1, 1]} : vector<16x3xf32> to vector<16x1xf32>
    %133 = vector.broadcast %132 : vector<16x1xf32> to vector<16x128xf32>
    %134 = arith.mulf %133, %124 : vector<16x128xf32>
    %135 = arith.addf %131, %134 : vector<16x128xf32>
    %cst_33 = arith.constant 0.000000e+00 : f32
    %136 = vector.broadcast %cst_33 : f32 to vector<16x128xf32>
    %137 = arith.maximumf %135, %136 : vector<16x128xf32>
    %138 = math.log %137 : vector<16x128xf32>
    %139 = vector.broadcast %75 : vector<16x1xf32> to vector<16x128xf32>
    %140 = arith.mulf %139, %138 : vector<16x128xf32>
    %141 = math.exp %140 : vector<16x128xf32>
    %cst_34 = arith.constant dense<0.000000e+00> : vector<16xf32>
    %142 = vector.multi_reduction <add>, %141, %cst_34 [1] : vector<16x128xf32> to vector<16xf32>
    %143 = vector.shape_cast %142 : vector<16xf32> to vector<16x1xf32>
    %cst_35 = arith.constant 1.000000e-16 : f32
    %144 = vector.broadcast %cst_35 : f32 to vector<16x1xf32>
    %145 = arith.addf %143, %144 : vector<16x1xf32>
    %146 = tpu.reciprocal %145 {approx = true} : vector<16x1xf32> -> vector<16x1xf32>
    %147 = arith.mulf %145, %146 : vector<16x1xf32>
    %cst_36 = arith.constant 2.000000e+00 : f32
    %148 = vector.broadcast %cst_36 : f32 to vector<16x1xf32>
    %149 = arith.subf %148, %147 : vector<16x1xf32>
    %150 = arith.mulf %146, %149 : vector<16x1xf32>
    %151 = vector.broadcast %150 : vector<16x1xf32> to vector<16x128xf32>
    %152 = arith.mulf %141, %151 : vector<16x128xf32>
    %153 = vector.shape_cast %152 : vector<16x128xf32> to vector<16x1x128xf32>
    %154 = vector.shape_cast %80 : vector<16x16xf32> to vector<16x16x1xf32>
    %155 = vector.broadcast %154 : vector<16x16x1xf32> to vector<16x16x128xf32>
    %156 = vector.broadcast %153 : vector<16x1x128xf32> to vector<16x16x128xf32>
    %157 = arith.mulf %155, %156 : vector<16x16x128xf32>
    %cst_37 = arith.constant 1.000000e+00 : f32
    %158 = vector.broadcast %cst_37 : f32 to vector<16x16x128xf32>
    %159 = arith.subf %158, %157 : vector<16x16x128xf32>
    %160 = arith.mulf %2, %159 : vector<16x16x128xf32>
    %161 = vector.shape_cast %11 : vector<16x16xf32> to vector<16x16x1xf32>
    %162 = vector.broadcast %161 : vector<16x16x1xf32> to vector<16x16x128xf32>
    %163 = vector.broadcast %153 : vector<16x1x128xf32> to vector<16x16x128xf32>
    %164 = arith.mulf %162, %163 : vector<16x16x128xf32>
    %165 = arith.addf %160, %164 : vector<16x16x128xf32>
    %c0_38 = arith.constant 0 : index
    %c0_39 = arith.constant 0 : index
    %166 = vector.load %arg6[%c0_38, %c0_39] : memref<16x128xf32, #tpu.memory_space<vmem>>, vector<16x128xf32>
    tpu.vector_store %arg6[%c0_38, %c0_39], %152 {strides = array<i32>} : memref<16x128xf32, #tpu.memory_space<vmem>>, vector<16x128xf32>,
    %c0_40 = arith.constant 0 : index
    %c0_41 = arith.constant 0 : index
    %c0_42 = arith.constant 0 : index
    %167 = vector.load %arg7[%c0_40, %c0_41, %c0_42] : memref<16x16x128xf32, #tpu.memory_space<vmem>>, vector<16x16x128xf32>
    tpu.vector_store %arg7[%c0_40, %c0_41, %c0_42], %165 {strides = array<i32>} : memref<16x16x128xf32, #tpu.memory_space<vmem>>, vector<16x16x128xf32>,
    return
  }
  func.func @transform_0(%arg0: i32) -> (i32, i32) {
    %c0_i32 = arith.constant 0 : i32
    %c0_i32_0 = arith.constant 0 : i32
    return %arg0, %c0_i32 : i32, i32
  }
  func.func @transform_1(%arg0: i32) -> (i32, i32) {
    %c0_i32 = arith.constant 0 : i32
    %c0_i32_0 = arith.constant 0 : i32
    return %arg0, %c0_i32 : i32, i32
  }
  func.func @transform_2(%arg0: i32) -> (i32, i32, i32) {
    %c0_i32 = arith.constant 0 : i32
    %c0_i32_0 = arith.constant 0 : i32
    %c0_i32_1 = arith.constant 0 : i32
    return %arg0, %c0_i32, %c0_i32_0 : i32, i32, i32
  }
  func.func @transform_3(%arg0: i32) -> (i32, i32) {
    %c0_i32 = arith.constant 0 : i32
    %c0_i32_0 = arith.constant 0 : i32
    %c0_i32_1 = arith.constant 0 : i32
    return %c0_i32, %c0_i32_0 : i32, i32
  }
  func.func @transform_4(%arg0: i32) -> (i32, i32) {
    %c0_i32 = arith.constant 0 : i32
    %c0_i32_0 = arith.constant 0 : i32
    %c0_i32_1 = arith.constant 0 : i32
    return %c0_i32, %c0_i32_0 : i32, i32
  }
  func.func @transform_5(%arg0: i32) -> (i32, i32) {
    %c0_i32 = arith.constant 0 : i32
    %c0_i32_0 = arith.constant 0 : i32
    return %arg0, %c0_i32 : i32, i32
  }
  func.func @transform_6(%arg0: i32) -> (i32, i32, i32) {
    %c0_i32 = arith.constant 0 : i32
    %c0_i32_0 = arith.constant 0 : i32
    %c0_i32_1 = arith.constant 0 : i32
    return %arg0, %c0_i32, %c0_i32_0 : i32, i32, i32
  }
}

</mosaic_0001>

<bundles_post_ra>
// kernel: _ntm_write_head_call.1
= control target key start
LH: loop header
LB: loop body
LE: loop exit
PB: predicated region body
PF: predicated region fallthrough
CT: control target
= control target key end

     0   :  { %12 = vsyncpa [#allocation3], 0  ;;  %s3164_s0 = inlined_call_operand.hbm [shape: f32[16,32], index: 0, kind: input, shape index: {}]   ;;  %s3165_s1 = inlined_call_operand.hbm [shape: f32[16,128], index: 1, kind: input, shape index: {}]   ;;  %s3166_s2 = inlined_call_operand.hbm [shape: f32[16,16,128], index: 2, kind: input, shape index: {}, may-alias: {2,6}]   ;;  %s3167_s3 = inlined_call_operand.hbm [shape: f32[32,384], index: 3, kind: input, shape index: {}]   ;;  %s3168_s4 = inlined_call_operand.vmem [shape: f32[1,384], index: 4, kind: input, shape index: {}]   ;;  %s3169_s5 = inlined_call_operand.hbm [shape: f32[16,128], index: 5, kind: output, shape index: {0}]   ;;  %s3170_s6 = inlined_call_operand.hbm [shape: f32[16,16,128], index: 6, kind: output, shape index: {1}, may-alias: {2,6}]  }
   0x1   :  { %13 = vsyncpa [#allocation6], 0 }
   0x2   :  { %14 = vsyncpa [#allocation9], 0 }
   0x3   :  { %15 = vsyncpa [#allocation4], 0 }
   0x4   :  { %16 = vsyncpa [#allocation12], 0  ;;  %s2296_s21 = smov [#allocation5]   ;;  %s2297_s23 = smov [#allocation2]  }
   0x5   :  { %s34_s22 = sshll.u32 %s2296_s21, 4  ;;  %s22_s24 = sshll.u32 %s2297_s23, 4  ;;  %s35_s22 = int_to_ptr.vmem [resolvable:$true] %s34_s22  ;;  %s2352_s24 = int_to_ptr.vmem [resolvable:$true] %s22_s24 }
   0x6   :  { %s2154_s27 = scalar_lea.hbm %s3165_s1, 256 }
   0x7   :  { %p2155_p0 = scmp.ne.s32.totalorder %s3165_s1, %s2154_s27  ;;  %p2158_p1 = scmp.lt.u32.totalorder %s2154_s27, %s3165_s1 }
   0x9   :  { %p2160_p2 = pnand %p2158_p1, %p2155_p0 }
   0xb   :  { %2163 = shalt.err (!%p2160_p2)
}
   0xc   :  { %s2164_s8 = scalar_lea.vmem %s35_s22, 256  ;;  %p2169_p4 = scmp.lt.s32.totalorder %s35_s22, %s35_s22 }
   0xd   :  { %p2165_p3 = scmp.ne.s32.totalorder %s35_s22, %s2164_s8  ;;  %p2170_p5 = scmp.lt.s32.totalorder %s2164_s8, %s2164_s8 }
   0xf   :  { %p2171_p6 = por %p2170_p5, %p2169_p4 }
  0x11   :  { %p2172_p7 = pnand %p2171_p6, %p2165_p3 }
  0x13   :  { %2175 = shalt.err (!%p2172_p7)
}
  0x14   :  { %s2298_s9 = smov 128   ;;  %s2299_s10 = smov 8  }
  0x15   :  { %40 = dma.hbm_to_vmem [thread:$0]  %s3165_s1, 256, %s35_s22, [#allocation6], %s2298_s9, %s2298_s9, %s2299_s10  }
  0x16   :  { %s2176_s15 = scalar_lea.hbm %s3164_s0, 256 }
  0x17   :  { %p2177_p8 = scmp.ne.s32.totalorder %s3164_s0, %s2176_s15  ;;  %p2180_p9 = scmp.lt.u32.totalorder %s2176_s15, %s3164_s0 }
  0x19   :  { %p2182_p10 = pnand %p2180_p9, %p2177_p8 }
  0x1b   :  { %2185 = shalt.err (!%p2182_p10)
}
  0x1c   :  { %s2186_s20 = scalar_lea.vmem %s2352_s24, 256  ;;  %p2191_p12 = scmp.lt.s32.totalorder %s2352_s24, %s2352_s24 }
  0x1d   :  { %p2187_p11 = scmp.ne.s32.totalorder %s2352_s24, %s2186_s20  ;;  %p2192_p13 = scmp.lt.s32.totalorder %s2186_s20, %s2186_s20 }
  0x1f   :  { %p2193_p0 = por %p2192_p13, %p2191_p12 }
  0x21   :  { %p2194_p1 = pnand %p2193_p0, %p2187_p11 }
  0x23   :  { %2197 = shalt.err (!%p2194_p1)
}
  0x24   :  { %28 = dma.hbm_to_vmem [thread:$0]  %s3164_s0, 256, %s2352_s24, [#allocation3], %s2298_s9, %s2298_s9, %s2299_s10  }
  0x25   :  { %s2300_s22 = smov [#allocation7]   ;;  %s2301_s25 = smov [#allocation8]  }
  0x26   :  { %s46_s23 = sshll.u32 %s2300_s22, 4  ;;  %s58_s26 = sshll.u32 %s2301_s25, 4  ;;  %s47_s23 = int_to_ptr.vmem [resolvable:$true] %s46_s23  ;;  %s2389_s26 = int_to_ptr.vmem [resolvable:$true] %s58_s26 }
  0x27   :  { %s2198_s29 = scalar_lea.hbm %s3166_s2, 4096 }
  0x28   :  { %p2199_p2 = scmp.ne.s32.totalorder %s3166_s2, %s2198_s29  ;;  %p2202_p3 = scmp.lt.u32.totalorder %s2198_s29, %s3166_s2 }
  0x2a   :  { %p2204_p4 = pnand %p2202_p3, %p2199_p2 }
  0x2c   :  { %2207 = shalt.err (!%p2204_p4)
}
  0x2d   :  { %s2208_s0 = scalar_lea.vmem %s47_s23, 4096  ;;  %p2213_p6 = scmp.lt.s32.totalorder %s47_s23, %s47_s23 }
  0x2e   :  { %p2209_p5 = scmp.ne.s32.totalorder %s47_s23, %s2208_s0  ;;  %p2214_p7 = scmp.lt.s32.totalorder %s2208_s0, %s2208_s0 }
  0x30   :  { %p2215_p8 = por %p2214_p7, %p2213_p6 }
  0x32   :  { %p2216_p9 = pnand %p2215_p8, %p2209_p5 }
  0x34   :  { %2219 = shalt.err (!%p2216_p9)
}
  0x35   :  { %52 = dma.hbm_to_vmem [thread:$0]  %s3166_s2, 4096, %s47_s23, [#allocation6], %s2298_s9, %s2298_s9, %s2299_s10  }
  0x36   :  { %s2220_s15 = scalar_lea.hbm %s3167_s3, 1536 }
  0x37   :  { %p2221_p10 = scmp.ne.s32.totalorder %s3167_s3, %s2220_s15  ;;  %p2224_p11 = scmp.lt.u32.totalorder %s2220_s15, %s3167_s3 }
  0x39   :  { %p2226_p12 = pnand %p2224_p11, %p2221_p10 }
  0x3b   :  { %2229 = shalt.err (!%p2226_p12)
}
  0x3c   :  { %s2230_s20 = scalar_lea.vmem %s2389_s26, 1536  ;;  %p2235_p0 = scmp.lt.s32.totalorder %s2389_s26, %s2389_s26 }
  0x3d   :  { %p2231_p13 = scmp.ne.s32.totalorder %s2389_s26, %s2230_s20  ;;  %p2236_p1 = scmp.lt.s32.totalorder %s2230_s20, %s2230_s20 }
  0x3f   :  { %p2237_p2 = por %p2236_p1, %p2235_p0 }
  0x41   :  { %p2238_p3 = pnand %p2237_p2, %p2231_p13 }
  0x43   :  { %2241 = shalt.err (!%p2238_p3)
}
  0x44   :  { %s2302_s2 = smov 384   ;;  %s2303_s1 = smov 24  }
  0x45   :  { %64 = dma.hbm_to_vmem [thread:$0]  %s3167_s3, 1536, %s2389_s26, [#allocation9], %s2302_s2, %s2302_s2, %s2303_s1  }
  0x46   :  { %2286 = dma.done.wait [#allocation3], 256  }
  0x47   :  { %2287 = vsyncadd [#allocation3], 4294967040 }
  0x48   :  { %2288 = dma.done.wait [#allocation6], 4352  }
  0x49   :  { %2289 = vsyncadd [#allocation6], 4294962944 }
  0x4a   :  { %2290 = dma.done.wait [#allocation9], 1536  }
  0x4b   :  { %2291 = vsyncadd [#allocation9], 4294965760  ;;  %v2304_v0 = vmov 0.0   ;;  %v116_v1 = vld [vmem:[#allocation8 + $0x8] sm:$0xff]  ;;  %v119_v2 = vld [vmem:[#allocation8 + $0x20] sm:$0xff]  ;;  %vm144_vm0 = vcmask 261120   ;;  %v129_v16 = vlaneseq }
  0x4c   :  { %215 = vmatprep.mubr.f32.mxu0 %v2304_v0  ;;  %v115_v3 = vld [vmem:[#allocation8] sm:$0xff]  ;;  %v1983_v4 = vpack.c.bf16 %v119_v2, %v116_v1  ;;  %v118_v5 = vld [vmem:[#allocation8 + $0x18] sm:$0xff]  ;;  %v125_v7 = vld [vmem:[#allocation8 + $0x50] sm:$0xff]  ;;  %v2305_v15 = vmov 16   ;;  %vm897_vm1 = vcmask 130048   ;;  %vm351_vm4 = vcmask 171152  }
  0x4d   :  { %v122_v6 = vld [vmem:[#allocation8 + $0x38] sm:$0xff]  ;;  %v1985_v8 = vpack.c.bf16 %v118_v5, %v115_v3  ;;  %v121_v10 = vld [vmem:[#allocation8 + $0x30] sm:$0xff]  ;;  %v124_v11 = vld [vmem:[#allocation8 + $0x48] sm:$0xff]  ;;  %2020 = vset.pattern.permute.xlu1 %v2305_v15  ;;  %2021 = vset.pattern.permute.xlu0 %v2305_v15  ;;  %v2426_v17 = vshrl.u32 %v129_v16, 7  ;;  %vm1031_vm7 = vcmask 1041409   ;;  %vm1034_vm8 = vcmask 1042434  }
  0x4e   :  { %v1987_v9 = vpack.c.bf16 %v125_v7, %v122_v6  ;;  %v79_v12 = vld [vmem:[#allocation2] sm:$0xff]  ;;  %1984 = vmatprep.subr.bf16.mxu0 %v1983_v4  ;;  %v1989_v13 = vpack.c.bf16 %v124_v11, %v121_v10  ;;  %v80_v14 = vld [vmem:[#allocation2 + $0x8] sm:$0xff]  ;;  %vm1037_vm9 = vcmask 1043459   ;;  %vm1040_vm10 = vcmask 1044484   ;;  %s2307_s25 = smov 110   ;;  %s2312_s26 = smov 1  }
  0x4f   :  { %1980 = vmatprep.mubr.msk.f32.mxu1 %vm144_vm0, %v79_v12  ;;  %1986 = vmatpush1.bf16.msra.mxu0 %v1985_v8  ;;  %3195 = vst [vmem:[#allocation18_spill] sm:$0xff] %v2426_v17  ;;  %v2429_v18 = vsub.s32 0, %v2426_v17  ;;  %v127_v19 = vld [vmem:[%s3168_s4] sm:$0x7]  ;;  %v2440_v24 = vsub.s32 1, %v2426_v17  ;;  %v2447_v31 = vsub.s32 3, %v2426_v17 }
  0x50   :  { %1988 = vmatprep.subr.bf16.mxu0 %v1987_v9  ;;  %v2457_v37 = vsub.s32 2, %v2426_v17  ;;  %v2460_v38 = vsub.s32 4, %v2426_v17  ;;  %v2467_v42 = vsub.s32 5, %v2426_v17  ;;  %v2472_v46 = vsub.s32 6, %v2426_v17  ;;  %s2313_s27 = smov 127  }
  0x51   :  { %3196 = vst [vmem:[#allocation19_spill] sm:$0xff] %v2429_v18  ;;  %v132_v20 = vrot.slane %v127_v19, %v2429_v18  ;;  %3198 = vst [vmem:[#allocation21_spill] sm:$0xff] %v2440_v24  ;;  %v2450_v33 = vrot.slane %v127_v19, %v2440_v24  ;;  %v2479_v51 = vsub.s32 7, %v2426_v17  ;;  %vm1043_vm11 = vcmask 1045509  }
  0x52   :  { %3199 = vst [vmem:[#allocation22_spill] sm:$0xff] %v2447_v31  ;;  %3202 = vst [vmem:[#allocation25_spill] sm:$0xff] %v2457_v37  ;;  %vm1046_vm12 = vcmask 1046534   ;;  %vm1049_vm13 = vcmask 1047559   ;;  %vm372_vm14 = vcmask 23552  }
  0x53   :  { %1990 = vmatpush1.bf16.msra.mxu0 %v1989_v13  ;;  %3200 = vst [vmem:[#allocation23_spill] sm:$0xff] %v2450_v33  ;;  %3203 = vst [vmem:[#allocation26_spill] sm:$0xff] %v2460_v38 }
  0x54   :  { %3205 = vst [vmem:[#allocation28_spill] sm:$0xff] %v2467_v42  ;;  %3206 = vst [vmem:[#allocation29_spill] sm:$0xff] %v2472_v46 }
  0x55   :  { %3207 = vst [vmem:[#allocation30_spill] sm:$0xff] %v2479_v51 }
  0x56   :  { %1958 = vmatmul.mubr.msk.f32.vlgmr.msra.gmra.mrb[0].mxu0 %vm144_vm0, %v79_v12 }
  0x57   :  { %221 = vmatprep.mubr.f32.mxu0 %v2304_v0 }
  0x5a   :  { %1959 = vmatmul.mubr.msk.f32.gmra.mrb[2].mxu0 %vm144_vm0, %v80_v14 }
 0x129   :  { %v217_v21 = vpop.f32.mrb[0].mxu0 }
 0x12a   :  { %v2435_v22 = vadd.f32 %v217_v21, %v132_v20  ;;  %v2437_v23 = vpop.f32.mrb[1].mxu0 }
 0x12b   :  { %3197 = vst [vmem:[#allocation20_spill] sm:$0xff] %v2437_v23 }
 0x12c   :  { %v309_v25 = vand.u32 2147483647, %v2435_v22  ;;  %v429_v26 = vadd.f32 1e-16, %v2435_v22  ;;  %v303_v59 = vmax.f32 %v2435_v22, 0.0  ;;  %vm305_vm3 = vcmp.ne.f32.partialorder %v2435_v22, %v2435_v22 }
 0x12d   :  { %v223_v27 = vpop.f32.mrb[2].mxu0 }
 0x12e   :  { %v311_v28 = vsub.f32 0.0, %v309_v25  ;;  %v445_v29 = vrot.slane %v429_v26, %v2440_v24  ;;  %v434_v30 = vrot.slane %v429_v26, %v2429_v18  ;;  %v225_v32 = vpop.f32.mrb[3].mxu0  ;;  %v467_v36 = vrot.slane %v429_v26, %v2447_v31 }
 0x12f   :  { %v2453_v35 = vadd.f32 %v225_v32, %v2450_v33  ;;  %v2462_v39 = vadd.f32 %v223_v27, %v132_v20  ;;  %v456_v40 = vrot.slane %v429_v26, %v2457_v37  ;;  %v478_v41 = vrot.slane %v429_v26, %v2460_v38 }
 0x130   :  { %v313_v34 = vmul.f32 1.442695, %v311_v28  ;;  %447 = vbcast.lane.b32.xlu1 %v445_v29, 256  ;;  %440 = vbcast.lane.b32.xlu0 %v434_v30, 264  ;;  %v489_v45 = vrot.slane %v429_v26, %v2467_v42  ;;  %v500_v50 = vrot.slane %v429_v26, %v2472_v46  ;;  %v511_v52 = vrot.slane %v429_v26, %v2479_v51  ;;  %v85_v28 = vld [vmem:[#allocation7 + $0x10] sm:$0xff] }
 0x131   :  { %3201 = vst [vmem:[#allocation24_spill] sm:$0xff] %v2453_v35  ;;  %3204 = vst [vmem:[#allocation27_spill] sm:$0xff] %v2462_v39  ;;  %v430_v43 = vadd.f32 1e-16, %v2462_v39  ;;  %v895_v1 = vmul.f32 %v429_v26, %v429_v26  ;;  %v310_v9 = vand.u32 2147483647, %v2462_v39  ;;  %vm306_vm6 = vcmp.ne.f32.partialorder %v2462_v39, %v2462_v39 }
 0x132   :  { %2032 = vpow2.f32 %v313_v34  ;;  %v2512_v32 = vadd.f32 1e-16, %v85_v28 }
 0x133   :  { %v896_v44 = vmul.f32 %v430_v43, %v430_v43  ;;  %v533_v63 = vrot.slane %v430_v43, %v2440_v24  ;;  %v544_v0 = vrot.slane %v430_v43, %v2457_v37  ;;  %v522_v2 = vrot.slane %v430_v43, %v2429_v18 }
 0x134   :  { %451 = vbcast.lane.b32.xlu1 %v445_v29, 264  ;;  %473 = vbcast.lane.b32.xlu0 %v467_v36, 264  ;;  %v898_v3 = vsel %vm897_vm1, %v895_v1, 0.0  ;;  %v555_v4 = vrot.slane %v430_v43, %v2447_v31  ;;  %v566_v5 = vrot.slane %v430_v43, %v2460_v38  ;;  %v577_v6 = vrot.slane %v430_v43, %v2467_v42 }
 0x135   :  { %v2475_v47 = vsel %vm897_vm1, %v896_v44, 0.0  ;;  %v588_v7 = vrot.slane %v430_v43, %v2472_v46  ;;  %v599_v8 = vrot.slane %v430_v43, %v2479_v51  ;;  %v312_v10 = vsub.f32 0.0, %v310_v9  ;;  %v88_v43 = vld [vmem:[#allocation7 + $0x28] sm:$0xff] }
 0x137   :  { %v315_v11 = vmul.f32 1.442695, %v312_v10 }
 0x138   :  { %458 = vbcast.lane.b32.xlu1 %v456_v40, 256  ;;  %484 = vbcast.lane.b32.xlu0 %v478_v41, 264 }
 0x13c   :  { %v2033_v48 = vpop.eup %2032  ;;  %462 = vbcast.lane.b32.xlu1 %v456_v40, 264  ;;  %495 = vbcast.lane.b32.xlu0 %v489_v45, 264 }
 0x13d   :  { %v317_v49 = vadd.f32 1.0, %v2033_v48  ;;  %v320_v53 = vmul.f32 -0.5, %v2033_v48  ;;  %v323_v55 = vand.u32 2147483647, %v2033_v48 }
 0x13f   :  { %2034 = vlog2.f32 %v317_v49  ;;  %v321_v54 = vadd.f32 1.0, %v320_v53  ;;  %vm324_vm2 = vcmp.lt.f32.partialorder %v323_v55, 0.0004427343  ;;  %v83_v53 = vld [vmem:[#allocation7] sm:$0xff] }
 0x140   :  { %506 = vbcast.lane.b32.xlu0 %v500_v50, 264  ;;  %436 = vbcast.lane.b32.xlu1 %v434_v30, 256  ;;  %2036 = vpow2.f32 %v315_v11  ;;  %v86_v30 = vld [vmem:[#allocation7 + $0x18] sm:$0xff] }
 0x141   :  { %v322_v58 = vmul.f32 %v2033_v48, %v321_v54  ;;  %v2514_v40 = vadd.f32 1e-16, %v86_v30  ;;  %v2521_v48 = vadd.f32 1e-16, %v88_v43  ;;  %v89_v54 = vld [vmem:[#allocation7 + $0x30] sm:$0xff]  ;;  %v95_v43 = vld [vmem:[#allocation7 + $0x60] sm:$0xff] }
 0x142   :  { %v2537_v1 = vadd.f32 1e-16, %v89_v54  ;;  %v96_v54 = vld [vmem:[#allocation7 + $0x68] sm:$0xff] }
 0x144   :  { %517 = vbcast.lane.b32.xlu0 %v511_v52, 264  ;;  %469 = vbcast.lane.b32.xlu1 %v467_v36, 256 }
 0x148   :  { %480 = vbcast.lane.b32.xlu1 %v478_v41, 256  ;;  %v87_v41 = vld [vmem:[#allocation7 + $0x20] sm:$0xff] }
 0x149   :  { %v2035_v56 = vpop.eup %2034 }
 0x14a   :  { %v319_v57 = vmul.f32 0.6931472, %v2035_v56  ;;  %v2037_v14 = vpop.eup %2036  ;;  %v2306_v56 = vmov 17  }
 0x14b   :  { %v326_v16 = vadd.f32 1.0, %v2037_v14  ;;  %v329_v21 = vmul.f32 -0.5, %v2037_v14  ;;  %v332_v29 = vand.u32 2147483647, %v2037_v14 }
 0x14c   :  { %491 = vbcast.lane.b32.xlu1 %v489_v45, 256  ;;  %v325_v60 = vsel %vm324_vm2, %v322_v58, %v319_v57  ;;  %v304_v45 = vmax.f32 %v2462_v39, 0.0  ;;  %v84_v57 = vld [vmem:[#allocation7 + $0x8] sm:$0xff] }
 0x14d   :  { %v335_v61 = vadd.f32 %v325_v60, %v303_v59  ;;  %2038 = vlog2.f32 %v326_v16  ;;  %v330_v26 = vadd.f32 1.0, %v329_v21  ;;  %vm333_vm5 = vcmp.lt.f32.partialorder %v332_v29, 0.0004427343  ;;  %v94_v16 = vld [vmem:[#allocation7 + $0x58] sm:$0xff] }
 0x14e   :  { %v756_v59 = vmul.f32 %v2521_v48, %v2521_v48  ;;  %v757_v21 = vmul.f32 %v2537_v1, %v2537_v1 }
 0x14f   :  { %v2486_v62 = vsel %vm305_vm3, %v2435_v22, %v335_v61  ;;  %v331_v36 = vmul.f32 %v2037_v14, %v330_v26  ;;  %v92_v14 = vld [vmem:[#allocation7 + $0x48] sm:$0xff] }
 0x150   :  { %502 = vbcast.lane.b32.xlu1 %v500_v50, 256  ;;  %v352_v12 = vsel %vm351_vm4, %v2486_v62, -inf  ;;  %v753_v50 = vmul.f32 %v2512_v32, %v2512_v32 }
 0x154   :  { %513 = vbcast.lane.b32.xlu1 %v511_v52, 256  ;;  %v754_v52 = vmul.f32 %v2514_v40, %v2514_v40 }
 0x156   :  { %v790_v61 = vadd.f32 %v754_v52, %v753_v50 }
 0x157   :  { %v2039_v27 = vpop.eup %2038 }
 0x158   :  { %539 = vbcast.lane.b32.xlu1 %v533_v63, 264  ;;  %v328_v34 = vmul.f32 0.6931472, %v2039_v27  ;;  %v791_v10 = vrot.slane %v790_v61, 4 }
 0x15a   :  { %v334_v49 = vsel %vm333_vm5, %v331_v36, %v328_v34  ;;  %v792_v30 = vadd.f32 %v791_v10, %v790_v61  ;;  %v2563_v34 = vadd.f32 1e-16, %v92_v14  ;;  %v2565_v36 = vadd.f32 1e-16, %v94_v16 }
 0x15b   :  { %v336_v55 = vadd.f32 %v334_v49, %v304_v45  ;;  %v97_v45 = vld [vmem:[#allocation7 + $0x70] sm:$0xff] }
 0x15c   :  { %546 = vbcast.lane.b32.xlu1 %v544_v0, 256  ;;  %v760_v52 = vmul.f32 %v2563_v34, %v2563_v34  ;;  %v2581_v61 = vadd.f32 1e-16, %v97_v45 }
 0x160   :  { %550 = vbcast.lane.b32.xlu1 %v544_v0, 264  ;;  %v2535_v0 = vadd.f32 1e-16, %v83_v53  ;;  %v762_v53 = vmul.f32 %v2565_v36, %v2565_v36 }
 0x162   :  { %v751_v11 = vmul.f32 %v2535_v0, %v2535_v0 }
 0x163   :  { %899 = vadd.xlane.f32.xlu0 %v898_v3  ;;  %v2542_v3 = vsel %vm306_vm6, %v2462_v39, %v336_v55  ;;  %v98_v55 = vld [vmem:[#allocation7 + $0x78] sm:$0xff] }
 0x164   :  { %524 = vbcast.lane.b32.xlu1 %v522_v2, 256  ;;  %3208 = vst [vmem:[#allocation31_spill] sm:$0xff] %v2542_v3  ;;  %v2585_v10 = vadd.f32 1e-16, %v98_v55 }
 0x168   :  { %557 = vbcast.lane.b32.xlu1 %v555_v4, 256 }
 0x16c   :  { %568 = vbcast.lane.b32.xlu1 %v566_v5, 256 }
 0x170   :  { %579 = vbcast.lane.b32.xlu1 %v577_v6, 256 }
 0x174   :  { %590 = vbcast.lane.b32.xlu1 %v588_v7, 256 }
 0x178   :  { %601 = vbcast.lane.b32.xlu1 %v599_v8, 256 }
 0x179   :  { %535 = vbcast.lane.b32.xlu0 %v533_v63, 256  ;;  %v90_v63 = vld [vmem:[#allocation7 + $0x38] sm:$0xff] }
 0x17c   :  { %1006 = vperm.xlu1 %2020, %v2486_v62  }
 0x17d   :  { %528 = vbcast.lane.b32.xlu0 %v522_v2, 264  ;;  %v2539_v2 = vadd.f32 1e-16, %v84_v57 }
 0x180   :  { %2022 = vset.pattern.permute.xlu1 %v2306_v56 }
 0x181   :  { %561 = vbcast.lane.b32.xlu0 %v555_v4, 264  ;;  %v2544_v4 = vadd.f32 1e-16, %v90_v63  ;;  %v793_v63 = vrot.slane %v792_v30, 2 }
 0x185   :  { %572 = vbcast.lane.b32.xlu0 %v566_v5, 264 }
 0x189   :  { %583 = vbcast.lane.b32.xlu0 %v577_v6, 264  ;;  %v91_v6 = vld [vmem:[#allocation7 + $0x40] sm:$0xff] }
 0x18a   :  { %v2559_v27 = vadd.f32 1e-16, %v91_v6 }
 0x18d   :  { %594 = vbcast.lane.b32.xlu0 %v588_v7, 264  ;;  %v93_v7 = vld [vmem:[#allocation7 + $0x50] sm:$0xff] }
 0x18e   :  { %v2561_v28 = vadd.f32 1e-16, %v93_v7 }
 0x190   :  { %v761_v57 = vmul.f32 %v2561_v28, %v2561_v28 }
 0x191   :  { %605 = vbcast.lane.b32.xlu0 %v599_v8, 264  ;;  %v752_v8 = vmul.f32 %v2539_v2, %v2539_v2 }
 0x192   :  { %v818_v14 = vadd.f32 %v762_v53, %v761_v57 }
 0x194   :  { %v819_v53 = vrot.slane %v818_v14, 4 }
 0x196   :  { %v820_v24 = vadd.f32 %v819_v53, %v818_v14 }
 0x1a0   :  { %353 = vmax.xlane.f32.xlu1 %v352_v12  ;;  %v758_v12 = vmul.f32 %v2544_v4, %v2544_v4 }
 0x1a2   :  { %v2501_v13 = vpop.permute.xlu1 %447  ;;  %v2549_v9 = vpop.permute.xlu0 %440  ;;  %v804_v49 = vadd.f32 %v758_v12, %v757_v21  ;;  %v766_v21 = vmul.f32 %v2585_v10, %v2585_v10 }
 0x1a6   :  { %v2503_v15 = vpop.permute.xlu1 %451  ;;  %v2567_v50 = vpop.permute.xlu0 %473 }
 0x1aa   :  { %v2505_v19 = vpop.permute.xlu1 %458  ;;  %v485_v45 = vpop.permute.xlu0 %484 }
 0x1ae   :  { %v2507_v20 = vpop.permute.xlu1 %462  ;;  %v496_v31 = vpop.permute.xlu0 %495 }
 0x1b0   :  { %902 = vadd.xlane.f32.xlu0 %v2475_v47  ;;  %v2519_v47 = vadd.f32 1e-16, %v87_v41  ;;  %v783_v41 = vadd.f32 %v752_v8, %v751_v11  ;;  %v2583_v8 = vadd.f32 1e-16, %v96_v54  ;;  %v805_v11 = vrot.slane %v804_v49, 4 }
 0x1b2   :  { %v2510_v25 = vpop.permute.xlu1 %436  ;;  %v755_v58 = vmul.f32 %v2519_v47, %v2519_v47  ;;  %v784_v7 = vrot.slane %v783_v41, 4  ;;  %v764_v16 = vmul.f32 %v2583_v8, %v2583_v8  ;;  %v806_v17 = vadd.f32 %v805_v11, %v804_v49 }
 0x1b3   :  { %v610_v49 = vmul.f32 %v2503_v15, %v2514_v40 }
 0x1b4   :  { %v797_v5 = vadd.f32 %v756_v59, %v755_v58  ;;  %v2577_v58 = vadd.f32 1e-16, %v95_v43  ;;  %v785_v55 = vadd.f32 %v784_v7, %v783_v41  ;;  %v807_v38 = vrot.slane %v806_v17, 2 }
 0x1b6   :  { %v2516_v44 = vpop.permute.xlu1 %469  ;;  %v798_v29 = vrot.slane %v797_v5, 4  ;;  %v763_v43 = vmul.f32 %v2577_v58, %v2577_v58  ;;  %v786_v42 = vrot.slane %v785_v55, 2  ;;  %v808_v7 = vadd.f32 %v807_v38, %v806_v17 }
 0x1b7   :  { %v613_v15 = vmul.f32 %v2516_v44, %v2537_v1  ;;  %v607_v38 = vmul.f32 %v2510_v25, %v2535_v0  ;;  %v608_v44 = vmul.f32 %v2549_v9, %v2539_v2  ;;  %v355_v1 = vsel %vm351_vm4, %v2542_v3, -inf }
 0x1b8   :  { %v799_v6 = vadd.f32 %v798_v29, %v797_v5  ;;  %v765_v5 = vmul.f32 %v2581_v61, %v2581_v61  ;;  %v794_v29 = vadd.f32 %v793_v63, %v792_v30  ;;  %v787_v41 = vadd.f32 %v786_v42, %v785_v55 }
 0x1b9   :  { %v809_v42 = vrot.slane %v808_v7, 1 }
 0x1ba   :  { %v2531_v60 = vpop.permute.xlu1 %480  ;;  %v800_v54 = vrot.slane %v799_v6, 2  ;;  %v832_v57 = vadd.f32 %v766_v21, %v765_v5  ;;  %v795_v51 = vrot.slane %v794_v29, 1  ;;  %v507_v5 = vpop.permute.xlu0 %506 }
 0x1bc   :  { %v801_v46 = vadd.f32 %v800_v54, %v799_v6  ;;  %v833_v23 = vrot.slane %v832_v57, 4  ;;  %v796_v30 = vadd.f32 %v795_v51, %v794_v29  ;;  %v609_v6 = vmul.f32 %v2501_v13, %v2512_v32 }
 0x1bd   :  { %v788_v54 = vrot.slane %v787_v41, 1  ;;  %v612_v51 = vmul.f32 %v2507_v20, %v2521_v48  ;;  %v611_v20 = vmul.f32 %v2505_v19, %v2519_v47  ;;  %v616_v48 = vmul.f32 %v485_v45, %v2563_v34 }
 0x1be   :  { %v2557_v26 = vpop.permute.xlu1 %491  ;;  %v802_v63 = vrot.slane %v801_v46, 1  ;;  %v618_v19 = vmul.f32 %v496_v31, %v2565_v36  ;;  %v620_v47 = vmul.f32 %v507_v5, %v2583_v8  ;;  %v518_v2 = vpop.permute.xlu0 %517 }
 0x1bf   :  { %v622_v31 = vmul.f32 %v518_v2, %v2585_v10 }
 0x1c0   :  { %v803_v14 = vadd.f32 %v802_v63, %v801_v46  ;;  %v614_v46 = vmul.f32 %v2567_v50, %v2544_v4  ;;  %v639_v4 = vadd.f32 %v608_v44, %v607_v38 }
 0x1c2   :  { %v2579_v59 = vpop.permute.xlu1 %502  ;;  %v660_v0 = vadd.f32 %v614_v46, %v613_v15 }
 0x1c3   :  { %v619_v25 = vmul.f32 %v2579_v59, %v2577_v58  ;;  %v810_v58 = vadd.f32 %v809_v42, %v808_v7 }
 0x1c4   :  { %v661_v36 = vrot.slane %v660_v0, 4 }
 0x1c5   :  { %v681_v45 = vadd.f32 %v620_v47, %v619_v25 }
 0x1c6   :  { %1011 = vperm.xlu0 %2021, %v2542_v3   ;;  %v514_v35 = vpop.permute.xlu1 %513 }
 0x1c7   :  { %v682_v7 = vrot.slane %v681_v45, 4 }
 0x1ca   :  { %2023 = vset.pattern.permute.xlu0 %v2306_v56  ;;  %v759_v56 = vmul.f32 %v2559_v27, %v2559_v27  ;;  %v2595_v33 = vpop.permute.xlu1 %539 }
 0x1cc   :  { %v811_v12 = vadd.f32 %v760_v52, %v759_v56  ;;  %v825_v56 = vadd.f32 %v764_v16, %v763_v43  ;;  %v821_v16 = vrot.slane %v820_v24, 2  ;;  %v834_v43 = vadd.f32 %v833_v23, %v832_v57 }
 0x1cd   :  { %v640_v57 = vrot.slane %v639_v4, 4 }
 0x1ce   :  { %v812_v52 = vrot.slane %v811_v12, 4  ;;  %v826_v18 = vrot.slane %v825_v56, 4  ;;  %v2605_v17 = vpop.permute.xlu1 %546  ;;  %v822_v23 = vadd.f32 %v821_v16, %v820_v24  ;;  %v835_v40 = vrot.slane %v834_v43, 2 }
 0x1d0   :  { %v813_v37 = vadd.f32 %v812_v52, %v811_v12  ;;  %v827_v21 = vadd.f32 %v826_v18, %v825_v56  ;;  %v905_v12 = vmax.f32 %v796_v30, 1e-16  ;;  %v646_v52 = vadd.f32 %v610_v49, %v609_v6 }
 0x1d1   :  { %v615_v18 = vmul.f32 %v2531_v60, %v2559_v27  ;;  %v653_v60 = vadd.f32 %v612_v51, %v611_v20  ;;  %v789_v27 = vadd.f32 %v788_v54, %v787_v41  ;;  %v823_v59 = vrot.slane %v822_v23, 1 }
 0x1d2   :  { %v814_v11 = vrot.slane %v813_v37, 2  ;;  %v828_v32 = vrot.slane %v827_v21, 2  ;;  %v647_v24 = vrot.slane %v646_v52, 4  ;;  %v2627_v50 = vpop.permute.xlu1 %550  ;;  %v836_v8 = vadd.f32 %v835_v40, %v834_v43 }
 0x1d3   :  { %v667_v9 = vadd.f32 %v616_v48, %v615_v18  ;;  %v654_v55 = vrot.slane %v653_v60, 4  ;;  %v906_v56 = vmax.f32 %v803_v14, 1e-16  ;;  %v904_v63 = vmax.f32 %v789_v27, 1e-16 }
 0x1d4   :  { %v815_v13 = vadd.f32 %v814_v11, %v813_v37  ;;  %v617_v37 = vmul.f32 %v2557_v26, %v2561_v28  ;;  %v829_v26 = vadd.f32 %v828_v32, %v827_v21  ;;  %v621_v28 = vmul.f32 %v514_v35, %v2581_v61 }
 0x1d5   :  { %v648_v53 = vadd.f32 %v647_v24, %v646_v52  ;;  %v668_v30 = vrot.slane %v667_v9, 4  ;;  %2040 = vrsqrt.f32 %v905_v12  ;;  %v907_v35 = vmax.f32 %v810_v58, 1e-16 }
 0x1d6   :  { %v816_v34 = vrot.slane %v815_v13, 1  ;;  %v674_v29 = vadd.f32 %v618_v19, %v617_v37  ;;  %v830_v49 = vrot.slane %v829_v26, 1  ;;  %v688_v11 = vadd.f32 %v622_v31, %v621_v28  ;;  %v2630_v54 = vpop.permute.xlu1 %524 }
 0x1d7   :  { %v655_v16 = vadd.f32 %v654_v55, %v653_v60  ;;  %v662_v6 = vadd.f32 %v661_v36, %v660_v0  ;;  %v824_v21 = vadd.f32 %v823_v59, %v822_v23  ;;  %v837_v5 = vrot.slane %v836_v8, 1 }
 0x1d8   :  { %v817_v41 = vadd.f32 %v816_v34, %v815_v13  ;;  %v675_v61 = vrot.slane %v674_v29, 4  ;;  %v649_v10 = vrot.slane %v648_v53, 2  ;;  %2042 = vrsqrt.f32 %v906_v56 }
 0x1d9   :  { %v641_v43 = vadd.f32 %v640_v57, %v639_v4  ;;  %v669_v14 = vadd.f32 %v668_v30, %v667_v9  ;;  %2044 = vrsqrt.f32 %v904_v63  ;;  %v831_v51 = vadd.f32 %v830_v49, %v829_v26  ;;  %v103_v49 = vld [vmem:[#allocation7 + $0xa0] sm:$0xff] }
 0x1da   :  { %v908_v52 = vmax.f32 %v817_v41, 1e-16  ;;  %v689_v42 = vrot.slane %v688_v11, 4  ;;  %2046 = vrsqrt.f32 %v907_v35  ;;  %v676_v15 = vadd.f32 %v675_v61, %v674_v29  ;;  %v2632_v25 = vpop.permute.xlu1 %557 }
 0x1db   :  { %v683_v12 = vadd.f32 %v682_v7, %v681_v45  ;;  %v656_v38 = vrot.slane %v655_v16, 2  ;;  %v663_v13 = vrot.slane %v662_v6, 2  ;;  %v909_v18 = vmax.f32 %v824_v21, 1e-16 }
 0x1dc   :  { %v838_v46 = vadd.f32 %v837_v5, %v836_v8  ;;  %v650_v23 = vadd.f32 %v649_v10, %v648_v53  ;;  %v642_v32 = vrot.slane %v641_v43, 2  ;;  %v670_v40 = vrot.slane %v669_v14, 2 }
 0x1dd   :  { %2048 = vrsqrt.f32 %v908_v52  ;;  %v910_v48 = vmax.f32 %v831_v51, 1e-16  ;;  %v690_v37 = vadd.f32 %v689_v42, %v688_v11  ;;  %v677_v24 = vrot.slane %v676_v15, 2  ;;  %v104_v11 = vld [vmem:[#allocation7 + $0xa8] sm:$0xff] }
 0x1de   :  { %v684_v60 = vrot.slane %v683_v12, 2  ;;  %v657_v0 = vadd.f32 %v656_v38, %v655_v16  ;;  %v651_v47 = vrot.slane %v650_v23, 1  ;;  %v643_v4 = vadd.f32 %v642_v32, %v641_v43  ;;  %v2634_v45 = vpop.permute.xlu1 %568 }
 0x1df   :  { %v2041_v19 = vpop.eup %2040  ;;  %v671_v2 = vadd.f32 %v670_v40, %v669_v14  ;;  %v911_v9 = vmax.f32 %v838_v46, 1e-16  ;;  %v691_v27 = vrot.slane %v690_v37, 2  ;;  %v678_v26 = vadd.f32 %v677_v24, %v676_v15 }
 0x1e0   :  { %v685_v28 = vadd.f32 %v684_v60, %v683_v12  ;;  %v658_v59 = vrot.slane %v657_v0, 1  ;;  %v652_v31 = vadd.f32 %v651_v47, %v650_v23  ;;  %v644_v36 = vrot.slane %v643_v4, 1  ;;  %v99_v47 = vld [vmem:[#allocation7 + $0x80] sm:$0xff] }
 0x1e1   :  { %v672_v8 = vrot.slane %v671_v2, 1  ;;  %v692_v53 = vadd.f32 %v691_v27, %v690_v37  ;;  %v679_v56 = vrot.slane %v678_v26, 1  ;;  %v2638_v42 = vadd.f32 1e-16, %v103_v49 }
 0x1e2   :  { %v2043_v34 = vpop.eup %2042  ;;  %v686_v57 = vrot.slane %v685_v28, 1  ;;  %v659_v63 = vadd.f32 %v658_v59, %v657_v0  ;;  %v937_v61 = vmul.f32 %v2041_v19, %v652_v31  ;;  %v645_v7 = vadd.f32 %v644_v36, %v643_v4  ;;  %v2636_v5 = vpop.permute.xlu1 %579  ;;  %v101_v59 = vld [vmem:[#allocation7 + $0x90] sm:$0xff] }
 0x1e3   :  { %v2045_v58 = vpop.eup %2044  ;;  %v673_v16 = vadd.f32 %v672_v8, %v671_v2  ;;  %v693_v21 = vrot.slane %v692_v53, 1  ;;  %v680_v52 = vadd.f32 %v679_v56, %v678_v26  ;;  %v2640_v15 = vadd.f32 1e-16, %v104_v11 }
 0x1e4   :  { %v2047_v55 = vpop.eup %2046  ;;  %v687_v51 = vadd.f32 %v686_v57, %v685_v28  ;;  %v938_v38 = vmul.f32 %v2043_v34, %v659_v63  ;;  %v771_v28 = vmul.f32 %v2638_v42, %v2638_v42  ;;  %v2651_v56 = vadd.f32 1e-16, %v99_v47 }
 0x1e5   :  { %356 = vmax.xlane.f32.xlu0 %v355_v1  ;;  %v664_v1 = vadd.f32 %v663_v13, %v662_v6  ;;  %v694_v40 = vadd.f32 %v693_v21, %v692_v53  ;;  %v772_v53 = vmul.f32 %v2640_v15, %v2640_v15 }
 0x1e6   :  { %v2642_v4 = vpop.permute.xlu1 %590 }
 0x1e7   :  { %v665_v29 = vrot.slane %v664_v1, 1  ;;  %v2049_v30 = vpop.eup %2048 }
 0x1e8   :  { %v940_v23 = vmul.f32 %v2049_v30, %v673_v16  ;;  %v106_v30 = vld [vmem:[#allocation7 + $0xb8] sm:$0xff] }
 0x1e9   :  { %v666_v41 = vadd.f32 %v665_v29, %v664_v1  ;;  %v100_v29 = vld [vmem:[#allocation7 + $0x88] sm:$0xff]  ;;  %v2663_v21 = vadd.f32 1e-16, %v106_v30 }
 0x1eb   :  { %v939_v13 = vmul.f32 %v2047_v55, %v666_v41  ;;  %v105_v41 = vld [vmem:[#allocation7 + $0xb0] sm:$0xff] }
 0x1f0   :  { %v900_v20 = vpop.xlane.xlu0 %899 }
 0x1f1   :  { %v952_v44 = vmax.f32 %v900_v20, 1e-16  ;;  %v936_v20 = vmul.f32 %v2045_v58, %v645_v7  ;;  %v2659_v7 = vadd.f32 1e-16, %v100_v29 }
 0x1f3   :  { %2050 = vrsqrt.f32 %v952_v44  ;;  %v102_v44 = vld [vmem:[#allocation7 + $0x98] sm:$0xff] }
 0x1f4   :  { %2052 = vrsqrt.f32 %v909_v18  ;;  %v2644_v26 = vadd.f32 1e-16, %v102_v44  ;;  %v2653_v57 = vpop.permute.xlu0 %535  ;;  %v774_v44 = vmul.f32 %v2663_v21, %v2663_v21 }
 0x1f5   :  { %2054 = vrsqrt.f32 %v910_v48 }
 0x1f6   :  { %2056 = vrsqrt.f32 %v911_v9 }
 0x1fd   :  { %v2051_v35 = vpop.eup %2050 }
 0x1fe   :  { %v2053_v6 = vpop.eup %2052  ;;  %v958_v10 = vrot.slane %v2051_v35, 1  ;;  %v959_v43 = vrot.slane %v2051_v35, 2  ;;  %v960_v14 = vrot.slane %v2051_v35, 3  ;;  %v961_v18 = vrot.slane %v2051_v35, 4 }
 0x1ff   :  { %v2055_v12 = vpop.eup %2054  ;;  %v962_v32 = vrot.slane %v2051_v35, 5  ;;  %v963_v48 = vrot.slane %v2051_v35, 6  ;;  %v941_v0 = vmul.f32 %v2053_v6, %v680_v52  ;;  %v964_v19 = vrot.slane %v2051_v35, 7  ;;  %v2661_v6 = vpop.permute.xlu1 %601 }
 0x200   :  { %v989_v46 = vmul.f32 %v958_v10, %v937_v61  ;;  %v990_v37 = vmul.f32 %v959_v43, %v938_v38  ;;  %v991_v24 = vmul.f32 %v960_v14, %v939_v13  ;;  %v2057_v60 = vpop.eup %2056  ;;  %v942_v1 = vmul.f32 %v2055_v12, %v687_v51  ;;  %3209 = vst [vmem:[#allocation32_spill] sm:$0xff] %v2661_v6 }
 0x201   :  { %v988_v2 = vmul.f32 %v2051_v35, %v936_v20  ;;  %v992_v9 = vmul.f32 %v961_v18, %v940_v23  ;;  %v993_v58 = vmul.f32 %v962_v32, %v941_v0  ;;  %v943_v55 = vmul.f32 %v2057_v60, %v694_v40  ;;  %v2678_v23 = vpop.permute.xlu0 %528 }
 0x202   :  { %v1030_v27 = vrot.slane %v989_v46, 7  ;;  %v1033_v34 = vrot.slane %v990_v37, 6  ;;  %v994_v31 = vmul.f32 %v963_v48, %v942_v1  ;;  %v1036_v8 = vrot.slane %v991_v24, 5  ;;  %v108_v37 = vld [vmem:[#allocation7 + $0xc8] sm:$0xff]  ;;  %v110_v24 = vld [vmem:[#allocation7 + $0xd8] sm:$0xff]  ;;  %v107_v1 = vld [vmem:[#allocation7 + $0xc0] sm:$0xff] }
 0x203   :  { %v995_v49 = vmul.f32 %v964_v19, %v943_v55  ;;  %v1039_v35 = vrot.slane %v992_v9, 4  ;;  %v2657_v61 = vadd.f32 1e-16, %v101_v59  ;;  %v1042_v16 = vrot.slane %v993_v58, 3  ;;  %v1007_v40 = vpop.permute.xlu1 %1006  ;;  %v109_v19 = vld [vmem:[#allocation7 + $0xd0] sm:$0xff] }
 0x204   :  { %v1032_v36 = vsel %vm1031_vm7, %v1030_v27, %v988_v2  ;;  %v1045_v43 = vrot.slane %v994_v31, 2  ;;  %v853_v52 = vadd.f32 %v772_v53, %v771_v28  ;;  %v2667_v51 = vadd.f32 1e-16, %v105_v41  ;;  %v112_v31 = vld [vmem:[#allocation7 + $0xe8] sm:$0xff]  ;;  %v111_v41 = vld [vmem:[#allocation7 + $0xe0] sm:$0xff] }
 0x205   :  { %v1035_v63 = vsel %vm1034_vm8, %v1033_v34, %v1032_v36  ;;  %v1048_v38 = vrot.slane %v995_v49, 1  ;;  %v770_v13 = vmul.f32 %v2644_v26, %v2644_v26  ;;  %v767_v18 = vmul.f32 %v2651_v56, %v2651_v56  ;;  %v2695_v59 = vpop.permute.xlu0 %561  ;;  %v114_v36 = vld [vmem:[#allocation7 + $0xf8] sm:$0xff]  ;;  %v113_v49 = vld [vmem:[#allocation7 + $0xf0] sm:$0xff] }
 0x206   :  { %v1038_v11 = vsel %vm1037_vm9, %v1036_v8, %v1035_v63  ;;  %v769_v46 = vmul.f32 %v2657_v61, %v2657_v61  ;;  %v768_v20 = vmul.f32 %v2659_v7, %v2659_v7  ;;  %v773_v32 = vmul.f32 %v2667_v51, %v2667_v51 }
 0x207   :  { %v1041_v10 = vsel %vm1040_vm10, %v1039_v35, %v1038_v11  ;;  %v854_v0 = vrot.slane %v853_v52, 4  ;;  %v2688_v27 = vadd.f32 1e-16, %v108_v37  ;;  %v2690_v34 = vadd.f32 1e-16, %v110_v24 }
 0x208   :  { %v1044_v14 = vsel %vm1043_vm11, %v1042_v16, %v1041_v10  ;;  %v846_v47 = vadd.f32 %v770_v13, %v769_v46  ;;  %v839_v2 = vadd.f32 %v768_v20, %v767_v18  ;;  %v860_v9 = vadd.f32 %v774_v44, %v773_v32 }
 0x209   :  { %v1047_v12 = vsel %vm1046_vm12, %v1045_v43, %v1044_v14  ;;  %v1962_v28 = vmul.f32 -1.442695, %v2435_v22  ;;  %v2693_v58 = vadd.f32 1e-16, %v107_v1  ;;  %v855_v29 = vadd.f32 %v854_v0, %v853_v52  ;;  %v573_v13 = vpop.permute.xlu0 %572 }
 0x20a   :  { %v1050_v48 = vsel %vm1049_vm13, %v1048_v38, %v1047_v12  ;;  %v2697_v55 = vadd.f32 1e-16, %v109_v19  ;;  %v847_v53 = vrot.slane %v846_v47, 4  ;;  %v840_v30 = vrot.slane %v839_v2, 4 }
 0x20b   :  { %v2685_v60 = vmul.f32 %v1050_v48, %v1007_v40  ;;  %v775_v8 = vmul.f32 %v2693_v58, %v2693_v58  ;;  %v861_v22 = vrot.slane %v860_v9, 4  ;;  %v776_v11 = vmul.f32 %v2688_v27, %v2688_v27 }
 0x20c   :  { %v777_v63 = vmul.f32 %v2697_v55, %v2697_v55  ;;  %v778_v35 = vmul.f32 %v2690_v34, %v2690_v34  ;;  %2058 = vpow2.f32 %v1962_v28  ;;  %v2707_v16 = vadd.f32 1e-16, %v112_v31 }
 0x20d   :  { %3210 = vst [vmem:[#allocation33_spill] sm:$0xff] %v2685_v60  ;;  %1069 = vmax.xlane.f32.xlu1 %v2685_v60  ;;  %v2709_v10 = vadd.f32 1e-16, %v114_v36  ;;  %v856_v43 = vrot.slane %v855_v29, 2  ;;  %v2711_v14 = vadd.f32 1e-16, %v111_v41  ;;  %v848_v12 = vadd.f32 %v847_v53, %v846_v47 }
 0x20e   :  { %v2713_v52 = vadd.f32 1e-16, %v113_v49  ;;  %v841_v38 = vadd.f32 %v840_v30, %v839_v2  ;;  %v862_v18 = vadd.f32 %v861_v22, %v860_v9  ;;  %v867_v46 = vadd.f32 %v776_v11, %v775_v8  ;;  %v584_v2 = vpop.permute.xlu0 %583 }
 0x20f   :  { %v874_v20 = vadd.f32 %v778_v35, %v777_v63  ;;  %v779_v32 = vmul.f32 %v2711_v14, %v2711_v14  ;;  %v780_v44 = vmul.f32 %v2707_v16, %v2707_v16  ;;  %v782_v48 = vmul.f32 %v2709_v10, %v2709_v10 }
 0x210   :  { %3211 = vst [vmem:[#allocation34_spill] sm:$0xff] %v2713_v52  ;;  %v781_v40 = vmul.f32 %v2713_v52, %v2713_v52  ;;  %v857_v37 = vadd.f32 %v856_v43, %v855_v29  ;;  %v849_v24 = vrot.slane %v848_v12, 2  ;;  %v842_v0 = vrot.slane %v841_v38, 2 }
 0x211   :  { %v863_v1 = vrot.slane %v862_v18, 2  ;;  %v868_v19 = vrot.slane %v867_v46, 4  ;;  %v875_v47 = vrot.slane %v874_v20, 4  ;;  %v881_v9 = vadd.f32 %v780_v44, %v779_v32 }
 0x212   :  { %v888_v28 = vadd.f32 %v782_v48, %v781_v40  ;;  %v858_v31 = vrot.slane %v857_v37, 1  ;;  %v850_v8 = vadd.f32 %v849_v24, %v848_v12  ;;  %v843_v53 = vadd.f32 %v842_v0, %v841_v38  ;;  %v595_v39 = vpop.permute.xlu0 %594 }
 0x213   :  { %v864_v30 = vadd.f32 %v863_v1, %v862_v18  ;;  %v869_v63 = vadd.f32 %v868_v19, %v867_v46  ;;  %v876_v41 = vadd.f32 %v875_v47, %v874_v20  ;;  %v882_v49 = vrot.slane %v881_v9, 4 }
 0x214   :  { %v889_v22 = vrot.slane %v888_v28, 4  ;;  %v859_v35 = vadd.f32 %v858_v31, %v857_v37  ;;  %v851_v29 = vrot.slane %v850_v8, 1  ;;  %v844_v43 = vrot.slane %v843_v53, 1 }
 0x215   :  { %v865_v60 = vrot.slane %v864_v30, 1  ;;  %v870_v3 = vrot.slane %v869_v63, 2  ;;  %v877_v6 = vrot.slane %v876_v41, 2  ;;  %v883_v52 = vadd.f32 %v882_v49, %v881_v9 }
 0x216   :  { %v2059_v36 = vpop.eup %2058  ;;  %v890_v32 = vadd.f32 %v889_v22, %v888_v28  ;;  %v627_v12 = vmul.f32 %v2605_v17, %v2638_v42  ;;  %v914_v38 = vmax.f32 %v859_v35, 1e-16  ;;  %v628_v18 = vmul.f32 %v2627_v50, %v2640_v15 }
 0x217   :  { %v345_v11 = vadd.f32 1.0, %v2059_v36  ;;  %v852_v46 = vadd.f32 %v851_v29, %v850_v8  ;;  %v625_v20 = vmul.f32 %v2653_v57, %v2657_v61  ;;  %v845_v40 = vadd.f32 %v844_v43, %v843_v53  ;;  %v606_v57 = vpop.permute.xlu0 %605 }
 0x218   :  { %v624_v44 = vmul.f32 %v2678_v23, %v2659_v7  ;;  %v2731_v48 = vadd.f32 %v865_v60, %v864_v30  ;;  %v630_v37 = vmul.f32 %v2695_v59, %v2663_v21  ;;  %v871_v24 = vadd.f32 %v870_v3, %v869_v63 }
 0x219   :  { %2060 = vrcp.f32 %v345_v11  ;;  %v878_v0 = vadd.f32 %v877_v6, %v876_v41  ;;  %v626_v17 = vmul.f32 %v2595_v33, %v2644_v26  ;;  %v623_v50 = vmul.f32 %v2630_v54, %v2651_v56 }
 0x21a   :  { %v884_v42 = vrot.slane %v883_v52, 2  ;;  %v891_v15 = vrot.slane %v890_v32, 2  ;;  %v709_v61 = vadd.f32 %v628_v18, %v627_v12  ;;  %v629_v7 = vmul.f32 %v2632_v25, %v2667_v51 }
 0x21b   :  { %v632_v23 = vmul.f32 %v573_v13, %v2688_v27  ;;  %v634_v60 = vmul.f32 %v584_v2, %v2690_v34  ;;  %v631_v3 = vmul.f32 %v2634_v45, %v2693_v58  ;;  %v633_v33 = vmul.f32 %v2636_v5, %v2697_v55  ;;  %v3212_v45 = vld [vmem:[#allocation34_spill] sm:$0xff]  ;;  %v3213_v58 = vld [vmem:[#allocation32_spill] sm:$0xff] }
 0x21c   :  { %v702_v26 = vadd.f32 %v626_v17, %v625_v20  ;;  %v695_v6 = vadd.f32 %v624_v44, %v623_v50  ;;  %v716_v56 = vadd.f32 %v630_v37, %v629_v7  ;;  %v636_v21 = vmul.f32 %v595_v39, %v2707_v16 }
 0x21d   :  { %v638_v59 = vmul.f32 %v606_v57, %v2709_v10  ;;  %v635_v51 = vmul.f32 %v2642_v4, %v2711_v14  ;;  %v872_v27 = vrot.slane %v871_v24, 1  ;;  %v879_v34 = vrot.slane %v878_v0, 1 }
 0x21e   :  { %v885_v13 = vadd.f32 %v884_v42, %v883_v52  ;;  %v637_v1 = vmul.f32 %v3213_v58, %v3212_v45  ;;  %v723_v5 = vadd.f32 %v632_v23, %v631_v3  ;;  %v730_v55 = vadd.f32 %v634_v60, %v633_v33 }
 0x21f   :  { %v710_v47 = vrot.slane %v709_v61, 4  ;;  %v703_v2 = vrot.slane %v702_v26, 4  ;;  %v696_v9 = vrot.slane %v695_v6, 4  ;;  %v892_v39 = vadd.f32 %v891_v15, %v890_v32 }
 0x220   :  { %v717_v10 = vrot.slane %v716_v56, 4  ;;  %v737_v28 = vadd.f32 %v636_v21, %v635_v51  ;;  %v744_v31 = vadd.f32 %v638_v59, %v637_v1  ;;  %v913_v4 = vmax.f32 %v852_v46, 1e-16 }
 0x221   :  { %v873_v14 = vadd.f32 %v872_v27, %v871_v24  ;;  %v886_v52 = vrot.slane %v885_v13, 1  ;;  %v912_v36 = vmax.f32 %v845_v40, 1e-16  ;;  %v724_v8 = vrot.slane %v723_v5, 4 }
 0x222   :  { %v880_v53 = vadd.f32 %v879_v34, %v878_v0  ;;  %v731_v30 = vrot.slane %v730_v55, 4  ;;  %v711_v63 = vadd.f32 %v710_v47, %v709_v61  ;;  %v704_v41 = vadd.f32 %v703_v2, %v702_v26 }
 0x223   :  { %v2754_v16 = vpop.eup %2060  ;;  %v697_v49 = vadd.f32 %v696_v9, %v695_v6  ;;  %v893_v22 = vrot.slane %v892_v39, 1  ;;  %v915_v11 = vmax.f32 %v2731_v48, 1e-16  ;;  %v718_v35 = vadd.f32 %v717_v10, %v716_v56 }
 0x224   :  { %v738_v29 = vrot.slane %v737_v28, 4  ;;  %v745_v43 = vrot.slane %v744_v31, 4  ;;  %v916_v32 = vmax.f32 %v873_v14, 1e-16  ;;  %v887_v12 = vadd.f32 %v886_v52, %v885_v13 }
 0x225   :  { %v917_v18 = vmax.f32 %v880_v53, 1e-16  ;;  %v732_v46 = vadd.f32 %v731_v30, %v730_v55  ;;  %v712_v20 = vrot.slane %v711_v63, 2  ;;  %v705_v40 = vrot.slane %v704_v41, 2 }
 0x226   :  { %v698_v44 = vrot.slane %v697_v49, 2  ;;  %v894_v37 = vadd.f32 %v893_v22, %v892_v39  ;;  %v719_v24 = vrot.slane %v718_v35, 2  ;;  %v739_v0 = vadd.f32 %v738_v29, %v737_v28 }
 0x227   :  { %v746_v17 = vadd.f32 %v745_v43, %v744_v31  ;;  %v918_v48 = vmax.f32 %v887_v12, 1e-16  ;;  %v733_v15 = vrot.slane %v732_v46, 2  ;;  %v713_v61 = vadd.f32 %v712_v20, %v711_v63 }
 0x228   :  { %v706_v7 = vadd.f32 %v705_v40, %v704_v41  ;;  %v699_v23 = vadd.f32 %v698_v44, %v697_v49  ;;  %v919_v60 = vmax.f32 %v894_v37, 1e-16  ;;  %v720_v33 = vadd.f32 %v719_v24, %v718_v35 }
 0x229   :  { %v740_v26 = vrot.slane %v739_v0, 2  ;;  %v747_v6 = vrot.slane %v746_v17, 2  ;;  %v734_v21 = vadd.f32 %v733_v15, %v732_v46 }
 0x22a   :  { %v707_v51 = vrot.slane %v706_v7, 1  ;;  %v700_v34 = vrot.slane %v699_v23, 1  ;;  %v721_v13 = vrot.slane %v720_v33, 1 }
 0x22b   :  { %v741_v45 = vadd.f32 %v740_v26, %v739_v0  ;;  %v748_v58 = vadd.f32 %v747_v6, %v746_v17  ;;  %v735_v55 = vrot.slane %v734_v21, 1 }
 0x22c   :  { %v708_v2 = vadd.f32 %v707_v51, %v706_v7  ;;  %v701_v39 = vadd.f32 %v700_v34, %v699_v23  ;;  %v722_v10 = vadd.f32 %v721_v13, %v720_v33  ;;  %v3214_v13 = vld [vmem:[#allocation31_spill] sm:$0xff] }
 0x22d   :  { %v354_v54 = vpop.xlane.xlu1 %353  ;;  %v742_v28 = vrot.slane %v741_v45, 1  ;;  %v749_v31 = vrot.slane %v748_v58, 1  ;;  %v736_v14 = vadd.f32 %v735_v55, %v734_v21 }
 0x22e   :  { %v358_v25 = vsub.f32 %v2486_v62, %v354_v54 }
 0x22f   :  { %v743_v41 = vadd.f32 %v742_v28, %v741_v45  ;;  %v750_v49 = vadd.f32 %v749_v31, %v748_v58  ;;  %v3215_v28 = vld [vmem:[#allocation33_spill] sm:$0xff] }
 0x230   :  { %v360_v19 = vmul.f32 1.442695, %v358_v25  ;;  %v714_v25 = vrot.slane %v713_v61, 1 }
 0x232   :  { %2062 = vpow2.f32 %v360_v19  ;;  %v715_v47 = vadd.f32 %v714_v25, %v713_v61 }
 0x233   :  { %2064 = vrsqrt.f32 %v914_v38  ;;  %v725_v38 = vadd.f32 %v724_v8, %v723_v5 }
 0x234   :  { %2066 = vrsqrt.f32 %v913_v4 }
 0x235   :  { %2068 = vrsqrt.f32 %v912_v36  ;;  %v726_v42 = vrot.slane %v725_v38, 2 }
 0x236   :  { %2070 = vrsqrt.f32 %v915_v11 }
 0x237   :  { %2072 = vrsqrt.f32 %v916_v32  ;;  %v727_v56 = vadd.f32 %v726_v42, %v725_v38 }
 0x238   :  { %2074 = vrsqrt.f32 %v917_v18 }
 0x239   :  { %2076 = vrsqrt.f32 %v918_v48  ;;  %v728_v5 = vrot.slane %v727_v56, 1 }
 0x23b   :  { %v729_v4 = vadd.f32 %v728_v5, %v727_v56  ;;  %v120_v5 = vld [vmem:[#allocation8 + $0x28] sm:$0xff] }
 0x23c   :  { %v2757_v50 = vpop.eup %2062 }
 0x23d   :  { %v2065_v57 = vpop.eup %2064  ;;  %v903_v3 = vpop.xlane.xlu0 %902  ;;  %366 = vrot.lane.b32.xlu1 %v2757_v50, %s2307_s25 }
 0x23e   :  { %v953_v54 = vmax.f32 %v903_v3, 1e-16  ;;  %v2067_v59 = vpop.eup %2066  ;;  %v946_v36 = vmul.f32 %v2065_v57, %v715_v47  ;;  %v126_v47 = vld [vmem:[#allocation8 + $0x58] sm:$0xff] }
 0x23f   :  { %v2069_v27 = vpop.eup %2068  ;;  %v945_v8 = vmul.f32 %v2067_v59, %v708_v2 }
 0x240   :  { %2078 = vrsqrt.f32 %v953_v54  ;;  %v2071_v1 = vpop.eup %2070  ;;  %v944_v30 = vmul.f32 %v2069_v27, %v701_v39  ;;  %v2120_v39 = vld [vmem:[#allocation2 + $0x8] sm:$0xff] }
 0x241   :  { %2080 = vrsqrt.f32 %v919_v60  ;;  %1089 = vperm.xlu1 %2022, %v2754_v16   ;;  %v2073_v19 = vpop.eup %2072  ;;  %v947_v63 = vmul.f32 %v2071_v1, %v722_v10  ;;  %v117_v1 = vld [vmem:[#allocation8 + $0x10] sm:$0xff] }
 0x242   :  { %v2075_v9 = vpop.eup %2074  ;;  %v948_v32 = vmul.f32 %v2073_v19, %v729_v4  ;;  %v1991_v55 = vpack.c.bf16 %v120_v5, %v117_v1  ;;  %v123_v19 = vld [vmem:[#allocation8 + $0x40] sm:$0xff]  ;;  %v3216_v4 = vld [vmem:[#allocation27_spill] sm:$0xff] }
 0x243   :  { %v2077_v52 = vpop.eup %2076  ;;  %v949_v12 = vmul.f32 %v2075_v9, %v736_v14  ;;  %v1995_v2 = vpack.c.bf16 %v126_v47, %v123_v19  ;;  %v1963_v14 = vmul.f32 -1.442695, %v3216_v4  ;;  %v3227_v1 = vld [vmem:[#allocation24_spill] sm:$0xff]  ;;  %v81_v4 = vld [vmem:[#allocation5] sm:$0xff] }
 0x244   :  { %v950_v37 = vmul.f32 %v2077_v52, %v743_v41  ;;  %1992 = vmatprep.subr.bf16.mxu1 %v1991_v55  ;;  %v1965_v5 = vmul.f32 -1.442695, %v3227_v1 }
 0x245   :  { %v1012_v25 = vpop.permute.xlu0 %1011  ;;  %1994 = vmatpush3.bf16.msra.mxu1 %v1991_v55 }
 0x246   :  { %1996 = vmatprep.subr.bf16.mxu1 %v1995_v2 }
 0x249   :  { %1998 = vmatpush3.bf16.msra.mxu1 %v1995_v2 }
 0x24a   :  { %v2079_v53 = vpop.eup %2078 }
 0x24b   :  { %v2081_v22 = vpop.eup %2080  ;;  %v965_v11 = vrot.slane %v2079_v53, 1  ;;  %v966_v35 = vrot.slane %v2079_v53, 2  ;;  %v967_v29 = vrot.slane %v2079_v53, 3  ;;  %v968_v43 = vrot.slane %v2079_v53, 4 }
 0x24c   :  { %v969_v38 = vrot.slane %v2079_v53, 5  ;;  %v970_v18 = vrot.slane %v2079_v53, 6  ;;  %v971_v46 = vrot.slane %v2079_v53, 7  ;;  %v951_v24 = vmul.f32 %v2081_v22, %v750_v49  ;;  %1981 = vmatmul.mubr.msk.f32.vlgmr.msra.gmra.mrb[0].mxu1 %vm144_vm0, %v2120_v39 }
 0x24d   :  { %v997_v20 = vmul.f32 %v965_v11, %v945_v8  ;;  %v998_v40 = vmul.f32 %v966_v35, %v946_v36  ;;  %v999_v44 = vmul.f32 %v967_v29, %v947_v63  ;;  %v1000_v0 = vmul.f32 %v968_v43, %v948_v32  ;;  %v3217_v36 = vld [vmem:[#allocation23_spill] sm:$0xff]  ;;  %v3218_v8 = vld [vmem:[#allocation20_spill] sm:$0xff] }
 0x24e   :  { %v996_v17 = vmul.f32 %v2079_v53, %v944_v30  ;;  %v1001_v48 = vmul.f32 %v969_v38, %v949_v12  ;;  %v1002_v57 = vmul.f32 %v970_v18, %v950_v37  ;;  %v1003_v61 = vmul.f32 %v971_v46, %v951_v24  ;;  %v3220_v37 = vld [vmem:[#allocation21_spill] sm:$0xff] }
 0x24f   :  { %v1051_v42 = vrot.slane %v997_v20, 7  ;;  %v1053_v15 = vrot.slane %v998_v40, 6  ;;  %v1055_v23 = vrot.slane %v999_v44, 5  ;;  %v1057_v3 = vrot.slane %v1000_v0, 4  ;;  %v3219_v20 = vld [vmem:[#allocation19_spill] sm:$0xff] }
 0x250   :  { %v1059_v26 = vrot.slane %v1001_v48, 3  ;;  %v1061_v54 = vrot.slane %v1002_v57, 2  ;;  %v1063_v21 = vrot.slane %v1003_v61, 1  ;;  %v220_v53 = vadd.f32 %v3218_v8, %v3217_v36  ;;  %v3224_v61 = vld [vmem:[#allocation28_spill] sm:$0xff] }
 0x251   :  { %v1052_v7 = vsel %vm1031_vm7, %v1051_v42, %v996_v17  ;;  %v1099_v43 = vsub.f32 1.0, %v2754_v16  ;;  %v383_v38 = vadd.f32 1.0, %v2486_v62  ;;  %v2308_v46 = vmov 21   ;;  %v3221_v16 = vld [vmem:[#allocation25_spill] sm:$0xff]  ;;  %v3222_v17 = vld [vmem:[#allocation22_spill] sm:$0xff] }
 0x252   :  { %v1054_v60 = vsel %vm1034_vm8, %v1053_v15, %v1052_v7  ;;  %v1964_v30 = vmul.f32 -1.442695, %v220_v53  ;;  %v2309_v44 = vmov 18   ;;  %v3223_v62 = vld [vmem:[#allocation26_spill] sm:$0xff] }
 0x253   :  { %v1056_v33 = vsel %vm1037_vm9, %v1055_v23, %v1054_v60  ;;  %v3225_v60 = vld [vmem:[#allocation29_spill] sm:$0xff] }
 0x254   :  { %v1058_v6 = vsel %vm1040_vm10, %v1057_v3, %v1056_v33 }
 0x255   :  { %v1060_v56 = vsel %vm1043_vm11, %v1059_v26, %v1058_v6 }
 0x256   :  { %v1062_v59 = vsel %vm1046_vm12, %v1061_v54, %v1060_v56  ;;  %v384_v54 = vadd.f32 1.0, %v3214_v13  ;;  %v2310_v56 = vmov 20  }
 0x257   :  { %v1064_v51 = vsel %vm1049_vm13, %v1063_v21, %v1062_v59 }
 0x258   :  { %v2769_v27 = vmul.f32 %v1064_v51, %v1012_v25 }
 0x25a   :  { %1071 = vmax.xlane.f32.xlu0 %v2769_v27 }
 0x272   :  { %v357_v34 = vpop.xlane.xlu0 %356 }
 0x273   :  { %v359_v45 = vsub.f32 %v3214_v13, %v357_v34  ;;  %v3226_v34 = vld [vmem:[#allocation30_spill] sm:$0xff] }
 0x275   :  { %v362_v58 = vmul.f32 1.442695, %v359_v45 }
 0x277   :  { %2082 = vpow2.f32 %v362_v58 }
 0x278   :  { %2084 = vpow2.f32 %v1963_v14 }
 0x281   :  { %v2773_v9 = vpop.eup %2082 }
 0x282   :  { %368 = vrot.lane.b32.xlu0 %v2773_v9, %s2307_s25  ;;  %v2085_v49 = vpop.eup %2084 }
 0x283   :  { %v346_v11 = vadd.f32 1.0, %v2085_v49 }
 0x29a   :  { %v1070_v10 = vpop.xlane.xlu1 %1069 }
 0x29b   :  { %v1073_v31 = vsub.f32 %v3215_v28, %v1070_v10 }
 0x29d   :  { %v1075_v52 = vmul.f32 1.442695, %v1073_v31 }
 0x29f   :  { %2086 = vpow2.f32 %v1075_v52 }
 0x2a0   :  { %2088 = vpow2.f32 %v1964_v30 }
 0x2a1   :  { %2090 = vrcp.f32 %v346_v11 }
 0x2a9   :  { %v2783_v22 = vpop.eup %2086 }
 0x2aa   :  { %v2089_v35 = vpop.eup %2088 }
 0x2ab   :  { %v391_v29 = vadd.f32 1.0, %v2089_v35  ;;  %v2091_v32 = vpop.eup %2090 }
 0x2ac   :  { %v1100_v12 = vsub.f32 1.0, %v2091_v32 }
 0x2ad   :  { %2092 = vrcp.f32 %v391_v29 }
 0x2af   :  { %v367_v63 = vpop.permute.xlu1 %366 }
 0x2b0   :  { %v373_v41 = vsel %vm372_vm14, %v367_v63, 0.0 }
 0x2b1   :  { %374 = vadd.xlane.f32.xlu1 %v373_v41  ;;  %v82_v41 = vld [vmem:[#allocation5 + $0x8] sm:$0xff] }
 0x2b5   :  { %1079 = vadd.xlane.f32.xlu1 %v2783_v22 }
 0x2b7   :  { %v2093_v18 = vpop.eup %2092 }
 0x2b8   :  { %v1300_v40 = vrot.slane %v2093_v18, %v3219_v20  ;;  %v1311_v24 = vrot.slane %v2093_v18, %v3220_v37  ;;  %v1322_v0 = vrot.slane %v2093_v18, %v3221_v16  ;;  %v1333_v48 = vrot.slane %v2093_v18, %v3222_v17 }
 0x2b9   :  { %v1344_v42 = vrot.slane %v2093_v18, %v3223_v62  ;;  %v1355_v7 = vrot.slane %v2093_v18, %v3224_v61  ;;  %v1366_v3 = vrot.slane %v2093_v18, %v3225_v60  ;;  %v1377_v13 = vrot.slane %v2093_v18, %v3226_v34 }
 0x2c0   :  { %v1090_v21 = vpop.permute.xlu1 %1089 }
 0x2c6   :  { %1103 = vperm.xlu1 %2022, %v1099_v43  }
 0x2ca   :  { %1108 = vperm.xlu1 %2022, %v1100_v12  }
 0x2ce   :  { %2024 = vset.pattern.permute.xlu1 %v2308_v46 }
 0x2cf   :  { %1167 = vperm.xlu1 %2024, %v383_v38  }
 0x2d3   :  { %1302 = vbcast.lane.b32.xlu1 %v1300_v40, 256 }
 0x2d4   :  { %2026 = vset.pattern.permute.xlu1 %v2309_v44 }
 0x2d7   :  { %1313 = vbcast.lane.b32.xlu1 %v1311_v24, 256 }
 0x2db   :  { %1317 = vbcast.lane.b32.xlu1 %v1311_v24, 264 }
 0x2df   :  { %1328 = vbcast.lane.b32.xlu1 %v1322_v0, 264 }
 0x2e3   :  { %1339 = vbcast.lane.b32.xlu1 %v1333_v48, 264 }
 0x2e7   :  { %v1072_v15 = vpop.xlane.xlu0 %1071  ;;  %1350 = vbcast.lane.b32.xlu1 %v1344_v42, 264 }
 0x2e8   :  { %v1074_v57 = vsub.f32 %v2769_v27, %v1072_v15  ;;  %v2311_v27 = vmov 19  }
 0x2ea   :  { %v1077_v23 = vmul.f32 1.442695, %v1074_v57 }
 0x2eb   :  { %1361 = vbcast.lane.b32.xlu1 %v1355_v7, 264 }
 0x2ec   :  { %2094 = vpow2.f32 %v1077_v23 }
 0x2ef   :  { %1372 = vbcast.lane.b32.xlu1 %v1366_v3, 264 }
 0x2f4   :  { %v369_v33 = vpop.permute.xlu0 %368 }
 0x2f5   :  { %v376_v26 = vsel %vm372_vm14, %v369_v33, 0.0 }
 0x2f6   :  { %377 = vadd.xlane.f32.xlu0 %v376_v26  ;;  %v2095_v6 = vpop.eup %2094 }
 0x2fa   :  { %1081 = vadd.xlane.f32.xlu0 %v2095_v6 }
 0x310   :  { %1094 = vperm.xlu0 %2023, %v2091_v32  }
 0x314   :  { %2025 = vset.pattern.permute.xlu0 %v2308_v46 }
 0x315   :  { %1172 = vperm.xlu0 %2025, %v384_v54  }
 0x319   :  { %1306 = vbcast.lane.b32.xlu0 %v1300_v40, 264 }
 0x31a   :  { %2028 = vset.pattern.permute.xlu0 %v2310_v56 }
 0x31d   :  { %1324 = vbcast.lane.b32.xlu0 %v1322_v0, 256 }
 0x31f   :  { %v2802_v45 = vpop.f32.mrb[0].mxu1 }
 0x320   :  { %v294_v58 = vpop.f32.mrb[1].mxu1 }
 0x321   :  { %1335 = vbcast.lane.b32.xlu0 %v1333_v48, 256 }
 0x325   :  { %1346 = vbcast.lane.b32.xlu0 %v1344_v42, 256 }
 0x329   :  { %1357 = vbcast.lane.b32.xlu0 %v1355_v7, 256 }
 0x32d   :  { %1368 = vbcast.lane.b32.xlu0 %v1366_v3, 256 }
 0x33e   :  { %v375_v59 = vpop.xlane.xlu1 %374 }
 0x33f   :  { %2096 = vrcp.f32 %v375_v59 }
 0x340   :  { %2098 = vpow2.f32 %v1965_v5 }
 0x342   :  { %v1080_v55 = vpop.xlane.xlu1 %1079 }
 0x343   :  { %2100 = vrcp.f32 %v1080_v55 }
 0x346   :  { %v1104_v14 = vpop.permute.xlu1 %1103 }
 0x347   :  { %v1111_v53 = vmul.f32 %v1104_v14, %v81_v4 }
 0x349   :  { %v2097_v25 = vpop.eup %2096 }
 0x34a   :  { %v380_v51 = vmul.f32 %v2097_v25, %v2757_v50  ;;  %v2099_v19 = vpop.eup %2098  ;;  %v1109_v49 = vpop.permute.xlu1 %1108 }
 0x34b   :  { %v392_v50 = vadd.f32 1.0, %v2099_v19  ;;  %v1112_v29 = vmul.f32 %v1109_v49, %v82_v41 }
 0x34c   :  { %1148 = vperm.xlu0 %2028, %v380_v51   ;;  %1125 = vperm.xlu1 %2026, %v380_v51  }
 0x34d   :  { %v2101_v39 = vpop.eup %2100 }
 0x34e   :  { %v1084_v31 = vmul.f32 %v2101_v39, %v2783_v22  ;;  %v1168_v3 = vpop.permute.xlu1 %1167 }
 0x350   :  { %2027 = vset.pattern.permute.xlu1 %v2311_v27  ;;  %2029 = vset.pattern.permute.xlu0 %v2309_v44  ;;  %v1097_v36 = vmul.f32 %v1090_v21, %v1084_v31 }
 0x351   :  { %1136 = vperm.xlu1 %2027, %v380_v51  }
 0x352   :  { %v2809_v63 = vadd.f32 %v1111_v53, %v1097_v36  ;;  %v2839_v54 = vpop.permute.xlu1 %1302 }
 0x355   :  { %1383 = vbcast.lane.b32.xlu1 %v1377_v13, 264 }
 0x356   :  { %v2843_v21 = vpop.permute.xlu1 %1313 }
 0x35a   :  { %v2847_v25 = vpop.permute.xlu1 %1317 }
 0x35e   :  { %v2849_v51 = vpop.permute.xlu1 %1328 }
 0x362   :  { %v2851_v27 = vpop.permute.xlu1 %1339 }
 0x383   :  { %v378_v47 = vpop.xlane.xlu0 %377 }
 0x384   :  { %2102 = vrcp.f32 %v378_v47 }
 0x385   :  { %2104 = vrcp.f32 %v392_v50 }
 0x387   :  { %v1082_v2 = vpop.xlane.xlu0 %1081 }
 0x388   :  { %2106 = vrcp.f32 %v1082_v2 }
 0x38e   :  { %v2103_v10 = vpop.eup %2102 }
 0x38f   :  { %v382_v28 = vmul.f32 %v2103_v10, %v2773_v9  ;;  %v2105_v52 = vpop.eup %2104  ;;  %v1095_v22 = vpop.permute.xlu0 %1094 }
 0x390   :  { %v1388_v30 = vrot.slane %v2105_v52, %v3219_v20  ;;  %v1399_v11 = vrot.slane %v2105_v52, %v3220_v37  ;;  %v1410_v43 = vrot.slane %v2105_v52, %v3221_v16  ;;  %v1421_v12 = vrot.slane %v2105_v52, %v3222_v17 }
 0x391   :  { %1130 = vperm.xlu0 %2029, %v382_v28   ;;  %1140 = vperm.xlu1 %2027, %v382_v28   ;;  %v1432_v38 = vrot.slane %v2105_v52, %v3223_v62  ;;  %v1443_v18 = vrot.slane %v2105_v52, %v3224_v61  ;;  %v1454_v44 = vrot.slane %v2105_v52, %v3225_v60 }
 0x392   :  { %v2107_v8 = vpop.eup %2106  ;;  %v1465_v0 = vrot.slane %v2105_v52, %v3226_v34 }
 0x393   :  { %v1086_v9 = vmul.f32 %v2107_v8, %v2095_v6 }
 0x395   :  { %1379 = vbcast.lane.b32.xlu0 %v1377_v13, 256  ;;  %2030 = vset.pattern.permute.xlu1 %v2310_v56  ;;  %v1098_v35 = vmul.f32 %v1095_v22, %v1086_v9  ;;  %v2853_v13 = vpop.permute.xlu1 %1350 }
 0x396   :  { %1152 = vperm.xlu1 %2030, %v382_v28   ;;  %2031 = vset.pattern.permute.xlu0 %v2308_v46  ;;  %v2121_v46 = vld [vmem:[%s3168_s4] sm:$0x7]  ;;  %s2315_s4 = smov [#allocation10]  }
 0x397   :  { %v2815_v32 = vadd.f32 %v1112_v29, %v1098_v35  ;;  %v140_v40 = vrot.slane %v2121_v46, %v3221_v16  ;;  %s1928_s30 = sshll.u32 %s2315_s4, 4  ;;  %s1929_s30 = int_to_ptr.vmem [resolvable:$true] %s1928_s30 }
 0x398   :  { %s2242_s7 = scalar_lea.vmem %s1929_s30, 256  ;;  %p2247_p5 = scmp.lt.s32.totalorder %s1929_s30, %s1929_s30 }
 0x399   :  { %1390 = vbcast.lane.b32.xlu0 %v1388_v30, 256  ;;  %v295_v24 = vadd.f32 %v294_v58, %v140_v40  ;;  %v2836_v26 = vadd.f32 %v2802_v45, %v140_v40  ;;  %v1173_v45 = vpop.permute.xlu0 %1172  ;;  %v2855_v58 = vpop.permute.xlu1 %1361  ;;  %p2243_p4 = scmp.ne.s32.totalorder %s1929_s30, %s2242_s7  ;;  %p2248_p6 = scmp.lt.s32.totalorder %s2242_s7, %s2242_s7 }
 0x39a   :  { %1115 = vrot.lane.b32.xlu1 %v2809_v63, %s2312_s26 }
 0x39b   :  { %v1652_v48 = vrot.slane %v295_v24, %v3219_v20  ;;  %v1663_v42 = vrot.slane %v295_v24, %v3220_v37  ;;  %v1674_v15 = vrot.slane %v295_v24, %v3221_v16  ;;  %v1685_v57 = vrot.slane %v295_v24, %v3222_v17  ;;  %p2249_p7 = por %p2248_p6, %p2247_p5 }
 0x39c   :  { %v1696_v7 = vrot.slane %v295_v24, %v3223_v62  ;;  %v1707_v23 = vrot.slane %v295_v24, %v3224_v61  ;;  %v1718_v33 = vrot.slane %v295_v24, %v3225_v60  ;;  %v1729_v6 = vrot.slane %v295_v24, %v3226_v34 }
 0x39d   :  { %1401 = vbcast.lane.b32.xlu0 %v1399_v11, 256  ;;  %v1740_v56 = vrot.slane %v2836_v26, %v3219_v20  ;;  %v1751_v59 = vrot.slane %v2836_v26, %v3220_v37  ;;  %v2857_v1 = vpop.permute.xlu0 %1306  ;;  %v2859_v37 = vpop.permute.xlu1 %1372  ;;  %p2250_p8 = pnand %p2249_p7, %p2243_p4 }
 0x39e   :  { %1119 = vrot.lane.b32.xlu1 %v2809_v63, %s2313_s27 }
 0x3a1   :  { %1412 = vbcast.lane.b32.xlu0 %v1410_v43, 256  ;;  %v2861_v55 = vpop.permute.xlu0 %1324 }
 0x3a2   :  { %1117 = vrot.lane.b32.xlu1 %v2815_v32, %s2312_s26 }
 0x3a5   :  { %1423 = vbcast.lane.b32.xlu0 %v1421_v12, 256  ;;  %v2863_v47 = vpop.permute.xlu0 %1335 }
 0x3a6   :  { %1121 = vrot.lane.b32.xlu1 %v2815_v32, %s2313_s27 }
 0x3a9   :  { %1434 = vbcast.lane.b32.xlu0 %v1432_v38, 256  ;;  %v2867_v2 = vpop.permute.xlu0 %1346 }
 0x3aa   :  { %1394 = vbcast.lane.b32.xlu1 %v1388_v30, 264 }
 0x3ad   :  { %1445 = vbcast.lane.b32.xlu0 %v1443_v18, 256  ;;  %v2869_v10 = vpop.permute.xlu0 %1357 }
 0x3ae   :  { %1405 = vbcast.lane.b32.xlu1 %v1399_v11, 264 }
 0x3b1   :  { %1456 = vbcast.lane.b32.xlu0 %v1454_v44, 256  ;;  %v2871_v31 = vpop.permute.xlu0 %1368 }
 0x3b2   :  { %1416 = vbcast.lane.b32.xlu1 %v1410_v43, 264 }
 0x3b5   :  { %1467 = vbcast.lane.b32.xlu0 %v1465_v0, 256 }
 0x3b6   :  { %1427 = vbcast.lane.b32.xlu1 %v1421_v12, 264 }
 0x3b9   :  { %1654 = vbcast.lane.b32.xlu0 %v1652_v48, 256 }
 0x3ba   :  { %1438 = vbcast.lane.b32.xlu1 %v1432_v38, 264 }
 0x3bd   :  { %1665 = vbcast.lane.b32.xlu0 %v1663_v42, 256 }
 0x3be   :  { %1449 = vbcast.lane.b32.xlu1 %v1443_v18, 264 }
 0x3c1   :  { %1676 = vbcast.lane.b32.xlu0 %v1674_v15, 256 }
 0x3c2   :  { %1460 = vbcast.lane.b32.xlu1 %v1454_v44, 264 }
 0x3c5   :  { %1687 = vbcast.lane.b32.xlu0 %v1685_v57, 256 }
 0x3c6   :  { %1471 = vbcast.lane.b32.xlu1 %v1465_v0, 264 }
 0x3c9   :  { %1698 = vbcast.lane.b32.xlu0 %v1696_v7, 256 }
 0x3ca   :  { %1658 = vbcast.lane.b32.xlu1 %v1652_v48, 264 }
 0x3cb   :  { %v1126_v5 = vpop.permute.xlu1 %1125  ;;  %v1149_v36 = vpop.permute.xlu0 %1148 }
 0x3cd   :  { %1709 = vbcast.lane.b32.xlu0 %v1707_v23, 256 }
 0x3ce   :  { %1669 = vbcast.lane.b32.xlu1 %v1663_v42, 264 }
 0x3d0   :  { %v1137_v19 = vpop.permute.xlu1 %1136 }
 0x3d1   :  { %1720 = vbcast.lane.b32.xlu0 %v1718_v33, 256  ;;  %v1143_v52 = vmul.f32 %v1137_v19, %v2809_v63 }
 0x3d2   :  { %1680 = vbcast.lane.b32.xlu1 %v1674_v15, 264 }
 0x3d4   :  { %v2865_v50 = vpop.permute.xlu1 %1383 }
 0x3d5   :  { %1731 = vbcast.lane.b32.xlu0 %v1729_v6, 256 }
 0x3d6   :  { %1691 = vbcast.lane.b32.xlu1 %v1685_v57, 264  ;;  %v1762_v57 = vrot.slane %v2836_v26, %v3221_v16  ;;  %v1817_v16 = vrot.slane %v2836_v26, %v3226_v34 }
 0x3d9   :  { %1742 = vbcast.lane.b32.xlu0 %v1740_v56, 256 }
 0x3da   :  { %1702 = vbcast.lane.b32.xlu1 %v1696_v7, 264  ;;  %v1773_v7 = vrot.slane %v2836_v26, %v3222_v17 }
 0x3dd   :  { %1753 = vbcast.lane.b32.xlu0 %v1751_v59, 256 }
 0x3de   :  { %1713 = vbcast.lane.b32.xlu1 %v1707_v23, 264  ;;  %v1784_v23 = vrot.slane %v2836_v26, %v3223_v62 }
 0x3e2   :  { %1724 = vbcast.lane.b32.xlu1 %v1718_v33, 264  ;;  %v1806_v33 = vrot.slane %v2836_v26, %v3225_v60 }
 0x3e6   :  { %1735 = vbcast.lane.b32.xlu1 %v1729_v6, 264 }
 0x3ea   :  { %1746 = vbcast.lane.b32.xlu1 %v1740_v56, 264 }
 0x3ee   :  { %1757 = vbcast.lane.b32.xlu1 %v1751_v59, 264 }
 0x410   :  { %v1141_v39 = vpop.permute.xlu1 %1140  ;;  %v1131_v41 = vpop.permute.xlu0 %1130 }
 0x411   :  { %v1144_v35 = vmul.f32 %v1141_v39, %v2815_v32 }
 0x414   :  { %v2895_v17 = vpop.permute.xlu0 %1379 }
 0x415   :  { %v1153_v28 = vpop.permute.xlu1 %1152 }
 0x419   :  { %v1116_v4 = vpop.permute.xlu1 %1115 }
 0x41a   :  { %v1133_v14 = vmul.f32 %v1126_v5, %v1116_v4 }
 0x41c   :  { %v1145_v53 = vadd.f32 %v1143_v52, %v1133_v14 }
 0x41d   :  { %v1120_v8 = vpop.permute.xlu1 %1119 }
 0x41e   :  { %v1155_v30 = vmul.f32 %v1149_v36, %v1120_v8 }
 0x420   :  { %v1157_v9 = vadd.f32 %v1155_v30, %v1145_v53 }
 0x421   :  { %v1118_v49 = vpop.permute.xlu1 %1117 }
 0x422   :  { %v1159_v22 = vmax.f32 %v1157_v9, 0.0  ;;  %v1134_v11 = vmul.f32 %v1131_v41, %v1118_v49 }
 0x424   :  { %2108 = vlog2.f32 %v1159_v22  ;;  %v1146_v43 = vadd.f32 %v1144_v35, %v1134_v11 }
 0x425   :  { %v1122_v29 = vpop.permute.xlu1 %1121 }
 0x426   :  { %v1156_v12 = vmul.f32 %v1153_v28, %v1122_v29 }
 0x428   :  { %v1158_v38 = vadd.f32 %v1156_v12, %v1146_v43 }
 0x429   :  { %v2893_v6 = vpop.permute.xlu1 %1394 }
 0x42a   :  { %v1160_v18 = vmax.f32 %v1158_v38, 0.0  ;;  %3228 = vst [vmem:[#allocation34_spill] sm:$0xff] %v2893_v6 }
 0x42c   :  { %2110 = vlog2.f32 %v1160_v18 }
 0x42d   :  { %v2897_v62 = vpop.permute.xlu1 %1405 }
 0x42e   :  { %v2109_v46 = vpop.eup %2108  ;;  %3229 = vst [vmem:[#allocation32_spill] sm:$0xff] %v2897_v62 }
 0x42f   :  { %v1162_v63 = vmul.f32 0.6931472, %v2109_v46 }
 0x431   :  { %v1175_v40 = vmul.f32 %v1168_v3, %v1162_v63  ;;  %v1795_v3 = vrot.slane %v2836_v26, %v3224_v61  ;;  %v2899_v61 = vpop.permute.xlu0 %1390  ;;  %v2901_v56 = vpop.permute.xlu1 %1416 }
 0x432   :  { %3230 = vst [vmem:[#allocation31_spill] sm:$0xff] %v2899_v61  ;;  %3231 = vst [vmem:[#allocation33_spill] sm:$0xff] %v2901_v56  ;;  %v2123_v61 = vld [vmem:[#allocation7 + $0x8] sm:$0xff] }
 0x433   :  { %v1177_v44 = vmul.f32 1.442695, %v1175_v40 }
 0x435   :  { %2112 = vpow2.f32 %v1177_v44  ;;  %v2903_v60 = vpop.permute.xlu0 %1401  ;;  %v2905_v59 = vpop.permute.xlu1 %1427 }
 0x436   :  { %v2111_v24 = vpop.eup %2110  ;;  %3232 = vst [vmem:[#allocation27_spill] sm:$0xff] %v2903_v60  ;;  %3233 = vst [vmem:[#allocation23_spill] sm:$0xff] %v2905_v59 }
 0x437   :  { %v1164_v0 = vmul.f32 0.6931472, %v2111_v24 }
 0x439   :  { %v1176_v48 = vmul.f32 %v1173_v45, %v1164_v0  ;;  %v2907_v34 = vpop.permute.xlu0 %1412  ;;  %v2909_v26 = vpop.permute.xlu1 %1438 }
 0x43a   :  { %3234 = vst [vmem:[#allocation20_spill] sm:$0xff] %v2907_v34  ;;  %3235 = vst [vmem:[#allocation21_spill] sm:$0xff] %v2909_v26 }
 0x43b   :  { %v1179_v42 = vmul.f32 1.442695, %v1176_v48 }
 0x43d   :  { %2114 = vpow2.f32 %v1179_v42  ;;  %v2911_v45 = vpop.permute.xlu0 %1423  ;;  %v2913_v5 = vpop.permute.xlu1 %1449 }
 0x43e   :  { %3236 = vst [vmem:[#allocation25_spill] sm:$0xff] %v2911_v45  ;;  %3237 = vst [vmem:[#allocation22_spill] sm:$0xff] %v2913_v5 }
 0x43f   :  { %v2875_v15 = vpop.eup %2112 }
 0x440   :  { %1181 = vadd.xlane.f32.xlu1 %v2875_v15 }
 0x441   :  { %v2915_v19 = vpop.permute.xlu0 %1434  ;;  %v2917_v39 = vpop.permute.xlu1 %1460 }
 0x442   :  { %3238 = vst [vmem:[#allocation26_spill] sm:$0xff] %v2915_v19  ;;  %3239 = vst [vmem:[#allocation28_spill] sm:$0xff] %v2917_v39 }
 0x445   :  { %v2919_v28 = vpop.permute.xlu0 %1445  ;;  %v2921_v4 = vpop.permute.xlu1 %1471 }
 0x446   :  { %3240 = vst [vmem:[#allocation29_spill] sm:$0xff] %v2919_v28  ;;  %3241 = vst [vmem:[#allocation30_spill] sm:$0xff] %v2921_v4  ;;  %v3248_v4 = vld [vmem:[#allocation18_spill] sm:$0xff] }
 0x447   :  { %v2878_v32 = vpop.eup %2114 }
 0x448   :  { %1183 = vadd.xlane.f32.xlu0 %v2878_v32 }
 0x449   :  { %v2923_v14 = vpop.permute.xlu0 %1456  ;;  %v2925_v52 = vpop.permute.xlu1 %1658 }
 0x44a   :  { %3242 = vst [vmem:[#allocation24_spill] sm:$0xff] %v2923_v14 }
 0x44d   :  { %v2927_v36 = vpop.permute.xlu0 %1467  ;;  %v2929_v8 = vpop.permute.xlu1 %1669 }
 0x44e   :  { %3243 = vst [vmem:[#allocation35_spill] sm:$0xff] %v2927_v36 }
 0x451   :  { %1768 = vbcast.lane.b32.xlu1 %v1762_v57, 264  ;;  %v2931_v53 = vpop.permute.xlu0 %1654  ;;  %v2933_v30 = vpop.permute.xlu1 %1680 }
 0x455   :  { %1779 = vbcast.lane.b32.xlu1 %v1773_v7, 264  ;;  %v2935_v9 = vpop.permute.xlu0 %1665  ;;  %v2937_v41 = vpop.permute.xlu1 %1691 }
 0x459   :  { %1790 = vbcast.lane.b32.xlu1 %v1784_v23, 264  ;;  %v2939_v49 = vpop.permute.xlu0 %1676  ;;  %v2941_v22 = vpop.permute.xlu1 %1702 }
 0x45d   :  { %1801 = vbcast.lane.b32.xlu1 %v1795_v3, 264  ;;  %v2943_v11 = vpop.permute.xlu0 %1687  ;;  %v2945_v35 = vpop.permute.xlu1 %1713 }
 0x45e   :  { %1764 = vbcast.lane.b32.xlu0 %v1762_v57, 256 }
 0x461   :  { %1812 = vbcast.lane.b32.xlu1 %v1806_v33, 264  ;;  %v2947_v29 = vpop.permute.xlu0 %1698  ;;  %v2949_v43 = vpop.permute.xlu1 %1724 }
 0x462   :  { %1775 = vbcast.lane.b32.xlu0 %v1773_v7, 256  ;;  %v2314_v7 = vmov 1966171168  }
 0x465   :  { %1823 = vbcast.lane.b32.xlu1 %v1817_v16, 264  ;;  %v2951_v12 = vpop.permute.xlu0 %1709  ;;  %v2953_v38 = vpop.permute.xlu1 %1735 }
 0x466   :  { %1786 = vbcast.lane.b32.xlu0 %v1784_v23, 256  ;;  %v1201_v23 = vunpack.c.l.s4 %v2314_v7 }
 0x469   :  { %v2955_v18 = vpop.permute.xlu0 %1720  ;;  %v2957_v46 = vpop.permute.xlu1 %1746 }
 0x46a   :  { %1797 = vbcast.lane.b32.xlu0 %v1795_v3, 256  ;;  %3244 = vst [vmem:[#allocation36_spill] sm:$0xff] %v2957_v46 }
 0x46d   :  { %v2959_v63 = vpop.permute.xlu0 %1731  ;;  %v2961_v40 = vpop.permute.xlu1 %1757 }
 0x46e   :  { %1808 = vbcast.lane.b32.xlu0 %v1806_v33, 256  ;;  %3245 = vst [vmem:[#allocation37_spill] sm:$0xff] %v2961_v40  ;;  %v1202_v33 = vunpack.c.0.s8 %v1201_v23 }
 0x470   :  { %v2968_v14 = vsub.s32 %v1202_v33, %v3248_v4 }
 0x471   :  { %v2963_v44 = vpop.permute.xlu0 %1742 }
 0x472   :  { %1819 = vbcast.lane.b32.xlu0 %v1817_v16, 256  ;;  %3246 = vst [vmem:[#allocation38_spill] sm:$0xff] %v2963_v44 }
 0x475   :  { %v2965_v48 = vpop.permute.xlu0 %1753 }
 0x476   :  { %3247 = vst [vmem:[#allocation39_spill] sm:$0xff] %v2965_v48 }
 0x4cd   :  { %v1182_v24 = vpop.xlane.xlu1 %1181 }
 0x4ce   :  { %v1185_v0 = vadd.f32 1e-16, %v1182_v24 }
 0x4d0   :  { %2116 = vrcp.f32 %v1185_v0 }
 0x4d5   :  { %v1184_v42 = vpop.xlane.xlu0 %1183 }
 0x4d6   :  { %v1186_v57 = vadd.f32 1e-16, %v1184_v42 }
 0x4d8   :  { %2118 = vrcp.f32 %v1186_v57 }
 0x4da   :  { %v2117_v3 = vpop.eup %2116 }
 0x4db   :  { %v1189_v16 = vmul.f32 %v2117_v3, %v1185_v0 }
 0x4dd   :  { %v1191_v36 = vsub.f32 2.0, %v1189_v16 }
 0x4df   :  { %v1193_v28 = vmul.f32 %v2117_v3, %v1191_v36 }
 0x4e1   :  { %v1195_v39 = vmul.f32 %v2875_v15, %v1193_v28 }
 0x4e2   :  { %v2119_v5 = vpop.eup %2118 }
 0x4e3   :  { %v1199_v24 = vcombine.high %v1195_v39, %v1195_v39  ;;  %v1206_v19 = vrot.slane %v1195_v39, %v2968_v14  ;;  %1889 = vst [vmem:[#allocation10] sm:$0xff] %v1195_v39  ;;  %v1190_v45 = vmul.f32 %v2119_v5, %v1186_v57 }
 0x4e5   :  { %v1213_v42 = vrot.slane %v1199_v24, %v2968_v14  ;;  %v1214_v7 = vcombine.high %v1206_v19, %v1206_v19  ;;  %v1222_v26 = vrot.slane %v1206_v19, %v2968_v14  ;;  %v1192_v23 = vsub.f32 2.0, %v1190_v45 }
 0x4e7   :  { %v1215_v0 = vcombine.high %v1213_v42, %v1213_v42  ;;  %v1229_v16 = vrot.slane %v1213_v42, %v2968_v14  ;;  %v1236_v4 = vrot.slane %v1214_v7, %v2968_v14  ;;  %v1244_v36 = vcombine.high %v1222_v26, %v1222_v26 }
 0x4e8   :  { %v2977_v15 = vrot.slane %v1222_v26, %v3219_v20  ;;  %v2979_v28 = vmul.f32 %v2119_v5, %v1192_v23 }
 0x4e9   :  { %v1243_v39 = vrot.slane %v1215_v0, %v2968_v14  ;;  %v1245_v57 = vcombine.high %v1229_v16, %v1229_v16  ;;  %v1246_v3 = vcombine.high %v1236_v4, %v1236_v4  ;;  %v2983_v33 = vrot.slane %v1236_v4, %v3219_v20 }
 0x4ea   :  { %v2986_v45 = vrot.slane %v1244_v36, %v3219_v20  ;;  %v2989_v19 = vrot.slane %v1229_v16, %v3219_v20  ;;  %v1553_v24 = vmul.f32 %v2977_v15, %v2839_v54  ;;  %v1554_v26 = vmul.f32 %v2977_v15, %v2857_v1 }
 0x4eb   :  { %v1247_v5 = vcombine.high %v1243_v39, %v1243_v39  ;;  %v2996_v42 = vrot.slane %v1246_v3, %v3219_v20  ;;  %v2999_v7 = vrot.slane %v1243_v39, %v3219_v20  ;;  %v3002_v23 = vrot.slane %v1245_v57, %v3219_v20 }
 0x4ec   :  { %v1555_v0 = vmul.f32 %v2983_v33, %v2843_v21  ;;  %v1556_v16 = vmul.f32 %v2983_v33, %v2847_v25  ;;  %v1557_v54 = vmul.f32 %v2986_v45, %v2861_v55  ;;  %v1558_v1 = vmul.f32 %v2986_v45, %v2849_v51 }
 0x4ed   :  { %v3013_v4 = vrot.slane %v1247_v5, %v3219_v20  ;;  %v1559_v36 = vmul.f32 %v2996_v42, %v2863_v47  ;;  %v1560_v39 = vmul.f32 %v2996_v42, %v2851_v27  ;;  %v1561_v21 = vmul.f32 %v2989_v19, %v2867_v2  ;;  %v2132_v20 = vld [vmem:[#allocation7 + $0x50] sm:$0xff] }
 0x4ee   :  { %v1562_v25 = vmul.f32 %v2989_v19, %v2853_v13  ;;  %v1563_v55 = vmul.f32 %v2999_v7, %v2869_v10  ;;  %v1564_v51 = vmul.f32 %v2999_v7, %v2855_v58  ;;  %v1565_v57 = vmul.f32 %v3002_v23, %v2871_v31 }
 0x4ef   :  { %v1566_v47 = vmul.f32 %v3002_v23, %v2859_v37  ;;  %v1567_v27 = vmul.f32 %v3013_v4, %v2895_v17  ;;  %v1568_v2 = vmul.f32 %v3013_v4, %v2865_v50  ;;  %v1585_v3 = vsub.f32 1.0, %v1553_v24  ;;  %v2122_v17 = vld [vmem:[#allocation7] sm:$0xff]  ;;  %v2124_v24 = vld [vmem:[#allocation7 + $0x10] sm:$0xff] }
 0x4f0   :  { %v1586_v13 = vsub.f32 1.0, %v1554_v26  ;;  %v1587_v5 = vsub.f32 1.0, %v1555_v0  ;;  %v1588_v59 = vsub.f32 1.0, %v1556_v16  ;;  %v1589_v10 = vsub.f32 1.0, %v1557_v54  ;;  %v2125_v0 = vld [vmem:[#allocation7 + $0x18] sm:$0xff]  ;;  %v2126_v54 = vld [vmem:[#allocation7 + $0x20] sm:$0xff] }
 0x4f1   :  { %v1590_v56 = vsub.f32 1.0, %v1558_v1  ;;  %v1591_v34 = vsub.f32 1.0, %v1559_v36  ;;  %v1592_v58 = vsub.f32 1.0, %v1560_v39  ;;  %v1593_v40 = vsub.f32 1.0, %v1561_v21  ;;  %v2127_v36 = vld [vmem:[#allocation7 + $0x28] sm:$0xff]  ;;  %v2128_v21 = vld [vmem:[#allocation7 + $0x30] sm:$0xff] }
 0x4f2   :  { %v1594_v48 = vsub.f32 1.0, %v1562_v25  ;;  %v1595_v31 = vsub.f32 1.0, %v1563_v55  ;;  %v1596_v62 = vsub.f32 1.0, %v1564_v51  ;;  %v1597_v60 = vsub.f32 1.0, %v1565_v57  ;;  %v2129_v55 = vld [vmem:[#allocation7 + $0x38] sm:$0xff]  ;;  %v2130_v57 = vld [vmem:[#allocation7 + $0x40] sm:$0xff] }
 0x4f3   :  { %v1598_v37 = vsub.f32 1.0, %v1566_v47  ;;  %v1599_v46 = vsub.f32 1.0, %v1567_v27  ;;  %v1600_v6 = vsub.f32 1.0, %v1568_v2  ;;  %v1617_v44 = vmul.f32 %v2122_v17, %v1585_v3  ;;  %v2131_v27 = vld [vmem:[#allocation7 + $0x48] sm:$0xff]  ;;  %v2133_v17 = vld [vmem:[#allocation7 + $0x58] sm:$0xff] }
 0x4f4   :  { %v1618_v50 = vmul.f32 %v2123_v61, %v1586_v13  ;;  %v1619_v26 = vmul.f32 %v2124_v24, %v1587_v5  ;;  %v1620_v16 = vmul.f32 %v2125_v0, %v1588_v59  ;;  %v1621_v1 = vmul.f32 %v2126_v54, %v1589_v10  ;;  %v2134_v13 = vld [vmem:[#allocation7 + $0x60] sm:$0xff]  ;;  %v2135_v24 = vld [vmem:[#allocation7 + $0x68] sm:$0xff]  ;;  %v2136_v0 = vld [vmem:[#allocation7 + $0x70] sm:$0xff] }
 0x4f5   :  { %v1622_v39 = vmul.f32 %v2127_v36, %v1590_v56  ;;  %v1623_v25 = vmul.f32 %v2128_v21, %v1591_v34  ;;  %v1624_v51 = vmul.f32 %v2129_v55, %v1592_v58  ;;  %v1625_v47 = vmul.f32 %v2130_v57, %v1593_v40  ;;  %v2137_v54 = vld [vmem:[#allocation7 + $0x78] sm:$0xff] }
 0x4f6   :  { %v1626_v2 = vmul.f32 %v2131_v27, %v1594_v48  ;;  %v1627_v3 = vmul.f32 %v2132_v20, %v1595_v31  ;;  %v1628_v61 = vmul.f32 %v2133_v17, %v1596_v62  ;;  %v1629_v5 = vmul.f32 %v2134_v13, %v1597_v60  ;;  %v3071_v31 = vpop.permute.xlu0 %1764 }
 0x4f7   :  { %v1630_v59 = vmul.f32 %v2135_v24, %v1598_v37  ;;  %v1631_v10 = vmul.f32 %v2136_v0, %v1599_v46  ;;  %v1632_v56 = vmul.f32 %v2137_v54, %v1600_v6  ;;  %v1825_v34 = vmul.f32 %v2931_v53, %v2977_v15 }
 0x4f8   :  { %v1826_v40 = vmul.f32 %v2925_v52, %v2977_v15  ;;  %v1827_v48 = vmul.f32 %v2935_v9, %v2983_v33  ;;  %v1828_v20 = vmul.f32 %v2929_v8, %v2983_v33  ;;  %v1829_v62 = vmul.f32 %v2939_v49, %v2986_v45 }
 0x4f9   :  { %v1830_v60 = vmul.f32 %v2933_v30, %v2986_v45  ;;  %v1831_v6 = vmul.f32 %v2943_v11, %v2996_v42  ;;  %v1832_v53 = vmul.f32 %v2937_v41, %v2996_v42  ;;  %v1833_v52 = vmul.f32 %v2947_v29, %v2989_v19 }
 0x4fa   :  { %v1834_v9 = vmul.f32 %v2941_v22, %v2989_v19  ;;  %v1835_v8 = vmul.f32 %v2951_v12, %v2999_v7  ;;  %v1836_v49 = vmul.f32 %v2945_v35, %v2999_v7  ;;  %v1837_v30 = vmul.f32 %v2955_v18, %v3002_v23 }
 0x4fb   :  { %v1838_v11 = vmul.f32 %v2949_v43, %v3002_v23  ;;  %v1839_v41 = vmul.f32 %v2959_v63, %v3013_v4  ;;  %v1840_v29 = vmul.f32 %v2953_v38, %v3013_v4  ;;  %v1857_v46 = vadd.f32 %v1825_v34, %v1617_v44  ;;  %v3067_v4 = vpop.permute.xlu1 %1768 }
 0x4fc   :  { %v1858_v22 = vadd.f32 %v1826_v40, %v1618_v50  ;;  %v1859_v15 = vadd.f32 %v1827_v48, %v1619_v26  ;;  %v1860_v33 = vadd.f32 %v1828_v20, %v1620_v16  ;;  %v1861_v12 = vadd.f32 %v1829_v62, %v1621_v1 }
 0x4fd   :  { %v1862_v35 = vadd.f32 %v1830_v60, %v1622_v39  ;;  %v1863_v45 = vadd.f32 %v1831_v6, %v1623_v25  ;;  %v1864_v19 = vadd.f32 %v1832_v53, %v1624_v51  ;;  %v1865_v18 = vadd.f32 %v1833_v52, %v1625_v47  ;;  %1891 = vst [vmem:[#allocation11] sm:$0xff] %v1857_v46 }
 0x4fe   :  { %v1866_v42 = vadd.f32 %v1834_v9, %v1626_v2  ;;  %v1867_v43 = vadd.f32 %v1835_v8, %v1627_v3  ;;  %v1868_v7 = vadd.f32 %v1836_v49, %v1628_v61  ;;  %v1869_v23 = vadd.f32 %v1837_v30, %v1629_v5  ;;  %1892 = vst [vmem:[#allocation11 + $0x8] sm:$0xff] %v1858_v22 }
 0x4ff   :  { %1893 = vst [vmem:[#allocation11 + $0x10] sm:$0xff] %v1859_v15  ;;  %1894 = vst [vmem:[#allocation11 + $0x18] sm:$0xff] %v1860_v33  ;;  %v1870_v38 = vadd.f32 %v1838_v11, %v1630_v59  ;;  %v1871_v63 = vadd.f32 %v1839_v41, %v1631_v10  ;;  %v1872_v44 = vadd.f32 %v1840_v29, %v1632_v56 }
 0x500   :  { %1895 = vst [vmem:[#allocation11 + $0x20] sm:$0xff] %v1861_v12  ;;  %1896 = vst [vmem:[#allocation11 + $0x28] sm:$0xff] %v1862_v35  ;;  %v1196_v58 = vmul.f32 %v2878_v32, %v2979_v28 }
 0x501   :  { %1897 = vst [vmem:[#allocation11 + $0x30] sm:$0xff] %v1863_v45  ;;  %1898 = vst [vmem:[#allocation11 + $0x38] sm:$0xff] %v1864_v19 }
 0x502   :  { %1899 = vst [vmem:[#allocation11 + $0x40] sm:$0xff] %v1865_v18  ;;  %1900 = vst [vmem:[#allocation11 + $0x48] sm:$0xff] %v1866_v42  ;;  %v1248_v37 = vcombine.high %v1196_v58, %v1196_v58  ;;  %v1255_v50 = vrot.slane %v1196_v58, %v2968_v14 }
 0x503   :  { %1901 = vst [vmem:[#allocation11 + $0x50] sm:$0xff] %v1867_v43  ;;  %1902 = vst [vmem:[#allocation11 + $0x58] sm:$0xff] %v1868_v7 }
 0x504   :  { %1903 = vst [vmem:[#allocation11 + $0x60] sm:$0xff] %v1869_v23  ;;  %1904 = vst [vmem:[#allocation11 + $0x68] sm:$0xff] %v1870_v38 }
 0x505   :  { %1905 = vst [vmem:[#allocation11 + $0x70] sm:$0xff] %v1871_v63  ;;  %1906 = vst [vmem:[#allocation11 + $0x78] sm:$0xff] %v1872_v44 }
 0x506   :  { %1890 = vst [vmem:[#allocation10 + $0x8] sm:$0xff] %v1196_v58 }
 0x507   :  { %2253 = shalt.err (!%p2250_p8)
}
 0x508   :  { %s2254_s0 = scalar_lea.hbm %s3169_s5, 256 }
 0x509   :  { %p2255_p9 = scmp.ne.s32.totalorder %s3169_s5, %s2254_s0  ;;  %p2258_p10 = scmp.lt.u32.totalorder %s2254_s0, %s3169_s5 }
 0x50b   :  { %p2260_p11 = pnand %p2258_p10, %p2255_p9 }
 0x50d   :  { %2263 = shalt.err (!%p2260_p11)
}
 0x50e   :  { %1934 = dma.vmem_to_hbm [thread:$0]  %s1929_s30, 256, %s3169_s5, [#allocation4], %s2298_s9, %s2298_s9, %s2299_s10   ;;  %v1263_v32 = vcombine.high %v1255_v50, %v1255_v50  ;;  %v1271_v28 = vrot.slane %v1255_v50, %v2968_v14  ;;  %v3091_v26 = vrot.slane %v1248_v37, %v2968_v14  ;;  %v1780_v1 = vpop.permute.xlu1 %1779  ;;  %v3249_v39 = vld [vmem:[#allocation19_spill] sm:$0xff]  ;;  %v3099_v55 = vpop.permute.xlu0 %1775  ;;  %v3251_v17 = vld [vmem:[#allocation38_spill] sm:$0xff]  ;;  %v3253_v24 = vld [vmem:[#allocation36_spill] sm:$0xff] }
 0x50f   :  { %v3250_v2 = vld [vmem:[#allocation31_spill] sm:$0xff]  ;;  %v3252_v13 = vld [vmem:[#allocation34_spill] sm:$0xff]  ;;  %v3255_v34 = vld [vmem:[#allocation32_spill] sm:$0xff]  ;;  %s2316_s5 = smov [#allocation11]  }
 0x510   :  { %v1285_v16 = vrot.slane %v1263_v32, %v2968_v14  ;;  %v1293_v36 = vcombine.high %v1271_v28, %v1271_v28  ;;  %v1508_v21 = vrot.slane %v1271_v28, %v3249_v39  ;;  %v3097_v25 = vrot.slane %v3091_v26, %v2968_v14  ;;  %v3254_v54 = vld [vmem:[#allocation27_spill] sm:$0xff]  ;;  %v3257_v62 = vld [vmem:[#allocation37_spill] sm:$0xff]  ;;  %v3258_v6 = vld [vmem:[#allocation20_spill] sm:$0xff]  ;;  %s1940_s17 = sshll.u32 %s2316_s5, 4  ;;  %s1941_s17 = int_to_ptr.vmem [resolvable:$true] %s1940_s17 }
 0x511   :  { %v1264_v51 = vcombine.high %v3091_v26, %v3091_v26  ;;  %v3256_v48 = vld [vmem:[#allocation39_spill] sm:$0xff]  ;;  %v3259_v9 = vld [vmem:[#allocation33_spill] sm:$0xff]  ;;  %v2138_v33 = vld [vmem:[#allocation7 + $0x80] sm:$0xff]  ;;  %s2264_s18 = scalar_lea.vmem %s1941_s17, 4096  ;;  %p2269_p13 = scmp.lt.s32.totalorder %s1941_s17, %s1941_s17 }
 0x512   :  { %v1295_v57 = vcombine.high %v1285_v16, %v1285_v16  ;;  %v1512_v47 = vrot.slane %v1285_v16, %v3249_v39  ;;  %v1516_v27 = vrot.slane %v1293_v36, %v3249_v39  ;;  %v1569_v3 = vmul.f32 %v1508_v21, %v3250_v2  ;;  %v3260_v49 = vld [vmem:[#allocation23_spill] sm:$0xff]  ;;  %v1791_v46 = vpop.permute.xlu1 %1790  ;;  %v1787_v22 = vpop.permute.xlu0 %1786  ;;  %v2139_v18 = vld [vmem:[#allocation7 + $0x90] sm:$0xff]  ;;  %v2141_v38 = vld [vmem:[#allocation7 + $0xa0] sm:$0xff]  ;;  %p2265_p12 = scmp.ne.s32.totalorder %s1941_s17, %s2264_s18  ;;  %p2270_p0 = scmp.lt.s32.totalorder %s2264_s18, %s2264_s18 }
 0x513   :  { %v1841_v61 = vmul.f32 %v3251_v17, %v1508_v21  ;;  %v1570_v5 = vmul.f32 %v1508_v21, %v3252_v13  ;;  %v1842_v59 = vmul.f32 %v3253_v24, %v1508_v21  ;;  %v3111_v0 = vrot.slane %v3097_v25, %v3249_v39  ;;  %v2140_v43 = vld [vmem:[#allocation7 + $0x98] sm:$0xff]  ;;  %v2142_v58 = vld [vmem:[#allocation7 + $0x88] sm:$0xff] }
 0x514   :  { %v3114_v10 = vrot.slane %v1295_v57, %v3249_v39  ;;  %v1571_v56 = vmul.f32 %v1512_v47, %v3254_v54  ;;  %v1572_v40 = vmul.f32 %v1512_v47, %v3255_v34  ;;  %v1843_v20 = vmul.f32 %v3256_v48, %v1512_v47  ;;  %v2143_v50 = vld [vmem:[#allocation7 + $0xa8] sm:$0xff]  ;;  %v2144_v28 = vld [vmem:[#allocation7 + $0xb8] sm:$0xff]  ;;  %p2271_p1 = por %p2270_p0, %p2269_p13 }
 0x515   :  { %v1844_v60 = vmul.f32 %v3257_v62, %v1512_v47  ;;  %v1573_v53 = vmul.f32 %v1516_v27, %v3258_v6  ;;  %v1601_v52 = vsub.f32 1.0, %v1569_v3  ;;  %v1574_v8 = vmul.f32 %v1516_v27, %v3259_v9  ;;  %v3261_v47 = vld [vmem:[#allocation21_spill] sm:$0xff]  ;;  %v2146_v6 = vld [vmem:[#allocation7 + $0xb0] sm:$0xff] }
 0x516   :  { %v1576_v30 = vmul.f32 %v3114_v10, %v3260_v49  ;;  %v1603_v11 = vsub.f32 1.0, %v1571_v56  ;;  %v1604_v41 = vsub.f32 1.0, %v1572_v40  ;;  %v1848_v29 = vmul.f32 %v1780_v1, %v3114_v10  ;;  %v3262_v17 = vld [vmem:[#allocation25_spill] sm:$0xff]  ;;  %v1802_v13 = vpop.permute.xlu1 %1801  ;;  %v3264_v9 = vld [vmem:[#allocation22_spill] sm:$0xff]  ;;  %v2147_v49 = vld [vmem:[#allocation7 + $0xc0] sm:$0xff]  ;;  %p2272_p2 = pnand %p2271_p1, %p2265_p12 }
 0x517   :  { %v1605_v15 = vsub.f32 1.0, %v1573_v53  ;;  %v1633_v12 = vmul.f32 %v2138_v33, %v1601_v52  ;;  %v1602_v35 = vsub.f32 1.0, %v1570_v5  ;;  %v1606_v45 = vsub.f32 1.0, %v1574_v8  ;;  %v1798_v5 = vpop.permute.xlu0 %1797  ;;  %v2145_v40 = vld [vmem:[#allocation7 + $0xc8] sm:$0xff] }
 0x518   :  { %v1608_v19 = vsub.f32 1.0, %v1576_v30  ;;  %v1635_v42 = vmul.f32 %v2139_v18, %v1603_v11  ;;  %v1636_v7 = vmul.f32 %v2140_v43, %v1604_v41  ;;  %v1845_v23 = vmul.f32 %v3071_v31, %v1516_v27  ;;  %v3265_v41 = vld [vmem:[#allocation28_spill] sm:$0xff] }
 0x519   :  { %v1637_v63 = vmul.f32 %v2141_v38, %v1605_v15  ;;  %v1873_v44 = vadd.f32 %v1841_v61, %v1633_v12  ;;  %v1634_v37 = vmul.f32 %v2142_v58, %v1602_v35  ;;  %v1638_v32 = vmul.f32 %v2143_v50, %v1606_v45  ;;  %v3266_v15 = vld [vmem:[#allocation29_spill] sm:$0xff]  ;;  %v2150_v50 = vld [vmem:[#allocation7 + $0xd0] sm:$0xff] }
 0x51a   :  { %v1640_v26 = vmul.f32 %v2144_v28, %v1608_v19  ;;  %v1875_v16 = vadd.f32 %v1843_v20, %v1635_v42  ;;  %v1876_v1 = vadd.f32 %v1844_v60, %v1636_v7  ;;  %v1846_v36 = vmul.f32 %v3067_v4, %v1516_v27  ;;  %v3263_v27 = vld [vmem:[#allocation26_spill] sm:$0xff]  ;;  %v3267_v42 = vld [vmem:[#allocation24_spill] sm:$0xff]  ;;  %v2148_v7 = vld [vmem:[#allocation7 + $0xd8] sm:$0xff] }
 0x51b   :  { %1907 = vst [vmem:[#allocation11 + $0x80] sm:$0xff] %v1873_v44  ;;  %v1874_v21 = vadd.f32 %v1842_v59, %v1634_v37  ;;  %v1877_v57 = vadd.f32 %v1845_v23, %v1637_v63  ;;  %v1578_v2 = vmul.f32 %v3111_v0, %v3261_v47  ;;  %v1575_v61 = vmul.f32 %v3114_v10, %v3262_v17  ;;  %v1809_v12 = vpop.permute.xlu0 %1808  ;;  %v3268_v23 = vld [vmem:[#allocation30_spill] sm:$0xff]  ;;  %v3269_v63 = vld [vmem:[#allocation35_spill] sm:$0xff]  ;;  %v2149_v58 = vld [vmem:[#allocation7 + $0xe8] sm:$0xff] }
 0x51c   :  { %1909 = vst [vmem:[#allocation11 + $0x90] sm:$0xff] %v1875_v16  ;;  %1910 = vst [vmem:[#allocation11 + $0x98] sm:$0xff] %v1876_v1  ;;  %v1880_v31 = vadd.f32 %v1848_v29, %v1640_v26  ;;  %v1878_v3 = vadd.f32 %v1846_v36, %v1638_v32  ;;  %v1292_v4 = vrot.slane %v1264_v51, %v2968_v14  ;;  %v2151_v47 = vld [vmem:[#allocation7 + $0xe0] sm:$0xff]  ;;  %v2152_v17 = vld [vmem:[#allocation7 + $0xf8] sm:$0xff] }
 0x51d   :  { %1908 = vst [vmem:[#allocation11 + $0x88] sm:$0xff] %v1874_v21  ;;  %1911 = vst [vmem:[#allocation11 + $0xa0] sm:$0xff] %v1877_v57  ;;  %v1610_v24 = vsub.f32 1.0, %v1578_v2  ;;  %v1577_v59 = vmul.f32 %v3111_v0, %v3263_v27  ;;  %v1850_v54 = vmul.f32 %v1791_v46, %v3111_v0  ;;  %v1607_v56 = vsub.f32 1.0, %v1575_v61  ;;  %v1813_v46 = vpop.permute.xlu1 %1812 }
 0x51e   :  { %1914 = vst [vmem:[#allocation11 + $0xb8] sm:$0xff] %v1880_v31  ;;  %1912 = vst [vmem:[#allocation11 + $0xa8] sm:$0xff] %v1878_v3  ;;  %v1294_v34 = vcombine.high %v3097_v25, %v3097_v25  ;;  %v1528_v20 = vrot.slane %v1292_v4, %v3249_v39  ;;  %v1296_v60 = vcombine.high %v1292_v4, %v1292_v4 }
 0x51f   :  { %v1642_v48 = vmul.f32 %v2145_v40, %v1610_v24  ;;  %v1609_v62 = vsub.f32 1.0, %v1577_v59  ;;  %v1639_v53 = vmul.f32 %v2146_v6, %v1607_v56  ;;  %v1847_v14 = vmul.f32 %v3099_v55, %v3114_v10  ;;  %v1820_v3 = vpop.permute.xlu0 %1819  ;;  %v2153_v24 = vld [vmem:[#allocation7 + $0xf0] sm:$0xff] }
 0x520   :  { %v1532_v51 = vrot.slane %v1294_v34, %v3249_v39  ;;  %v1580_v8 = vmul.f32 %v1528_v20, %v3264_v9  ;;  %v1849_v25 = vmul.f32 %v1787_v22, %v3111_v0  ;;  %v1579_v33 = vmul.f32 %v1528_v20, %v3266_v15 }
 0x521   :  { %v1882_v52 = vadd.f32 %v1850_v54, %v1642_v48  ;;  %v1641_v30 = vmul.f32 %v2147_v49, %v1609_v62  ;;  %v1879_v11 = vadd.f32 %v1847_v14, %v1639_v53  ;;  %v1536_v55 = vrot.slane %v1296_v60, %v3249_v39  ;;  %v1824_v57 = vpop.permute.xlu1 %1823 }
 0x522   :  { %v1582_v29 = vmul.f32 %v1532_v51, %v3265_v41  ;;  %v1612_v35 = vsub.f32 1.0, %v1580_v8  ;;  %v1852_v10 = vmul.f32 %v1802_v13, %v1528_v20  ;;  %v1611_v18 = vsub.f32 1.0, %v1579_v33 }
 0x523   :  { %1916 = vst [vmem:[#allocation11 + $0xc8] sm:$0xff] %v1882_v52  ;;  %v1881_v45 = vadd.f32 %v1849_v25, %v1641_v30  ;;  %1913 = vst [vmem:[#allocation11 + $0xb0] sm:$0xff] %v1879_v11  ;;  %v1581_v43 = vmul.f32 %v1532_v51, %v3267_v42  ;;  %v1854_v22 = vmul.f32 %v1813_v46, %v1532_v51 }
 0x524   :  { %v1614_v19 = vsub.f32 1.0, %v1582_v29  ;;  %v1644_v0 = vmul.f32 %v2148_v7, %v1612_v35  ;;  %v1584_v38 = vmul.f32 %v1536_v55, %v3268_v23  ;;  %v1583_v44 = vmul.f32 %v1536_v55, %v3269_v63 }
 0x525   :  { %1915 = vst [vmem:[#allocation11 + $0xc0] sm:$0xff] %v1881_v45  ;;  %v1643_v32 = vmul.f32 %v2150_v50, %v1611_v18  ;;  %v1851_v28 = vmul.f32 %v1798_v5, %v1528_v20  ;;  %v1613_v39 = vsub.f32 1.0, %v1581_v43  ;;  %v1853_v31 = vmul.f32 %v1809_v12, %v1532_v51 }
 0x526   :  { %v1646_v37 = vmul.f32 %v2149_v58, %v1614_v19  ;;  %v1884_v26 = vadd.f32 %v1852_v10, %v1644_v0  ;;  %v1616_v16 = vsub.f32 1.0, %v1584_v38  ;;  %v1615_v1 = vsub.f32 1.0, %v1583_v44 }
 0x527   :  { %v1883_v21 = vadd.f32 %v1851_v28, %v1643_v32  ;;  %v1645_v2 = vmul.f32 %v2151_v47, %v1613_v39  ;;  %v1856_v13 = vmul.f32 %v1824_v57, %v1536_v55  ;;  %v1855_v5 = vmul.f32 %v1820_v3, %v1536_v55 }
 0x528   :  { %v1886_v36 = vadd.f32 %v1854_v22, %v1646_v37  ;;  %1918 = vst [vmem:[#allocation11 + $0xd8] sm:$0xff] %v1884_v26  ;;  %v1648_v61 = vmul.f32 %v2152_v17, %v1616_v16  ;;  %v1647_v4 = vmul.f32 %v2153_v24, %v1615_v1 }
 0x529   :  { %1917 = vst [vmem:[#allocation11 + $0xd0] sm:$0xff] %v1883_v21  ;;  %v1885_v27 = vadd.f32 %v1853_v31, %v1645_v2 }
 0x52a   :  { %1920 = vst [vmem:[#allocation11 + $0xe8] sm:$0xff] %v1886_v36  ;;  %v1888_v59 = vadd.f32 %v1856_v13, %v1648_v61  ;;  %v1887_v54 = vadd.f32 %v1855_v5, %v1647_v4 }
 0x52b   :  { %1919 = vst [vmem:[#allocation11 + $0xe0] sm:$0xff] %v1885_v27 }
 0x52c   :  { %1922 = vst [vmem:[#allocation11 + $0xf8] sm:$0xff] %v1888_v59  ;;  %1921 = vst [vmem:[#allocation11 + $0xf0] sm:$0xff] %v1887_v54 }
 0x52d   :  { %2275 = shalt.err (!%p2272_p2)
}
 0x52e   :  { %s2276_s2 = scalar_lea.hbm %s3170_s6, 4096 }
 0x52f   :  { %p2277_p3 = scmp.ne.s32.totalorder %s3170_s6, %s2276_s2  ;;  %p2280_p4 = scmp.lt.u32.totalorder %s2276_s2, %s3170_s6 }
 0x531   :  { %p2282_p5 = pnand %p2280_p4, %p2277_p3 }
 0x533   :  { %2285 = shalt.err (!%p2282_p5)
}
 0x534   :  { %1946 = dma.vmem_to_hbm [thread:$0]  %s1941_s17, 4096, %s3170_s6, [#allocation12], %s2298_s9, %s2298_s9, %s2299_s10  }
 0x535   :  { %2292 = dma.done.wait [#allocation4], 256  }
 0x536   :  { %2293 = vsyncadd [#allocation4], 4294967040 }
 0x537   :  { %2294 = dma.done.wait [#allocation12], 4096  }
 0x538   :  { %2295 = vsyncadd [#allocation12], 4294963200 }
 0x539   :  { %1953 = vsyncpa [#allocation3], 1 }
 0x53a   :  { %1954 = vsyncpa [#allocation6], 1 }
 0x53b   :  { %1955 = vsyncpa [#allocation9], 1 }
 0x53c   :  { %1956 = vsyncpa [#allocation4], 1 }
 0x53d   :  { %1957 = vsyncpa [#allocation12], 1 }

</bundles_post_ra>
